<compile_context>
chip_gen: v7x
topology: tpu7x:2x2x1
jax: 0.10.0
libtpu: 0.0.40
codegen_flags: <defaults>
</compile_context>

<pallas_src>
import functools

import jax
import jax.numpy as jnp
from jax import lax
from jax.experimental import pallas as pl
from jax.experimental.pallas import tpu as pltpu

# pl.Squeezed() drops the size-1 grid dim from the kernel view; None is the
# long-standing equivalent, kept as a fallback.
_SQUEEZED = pl.Squeezed() if hasattr(pl, "Squeezed") else None


# ---------------------------------------------------------------------------
# In-kernel helpers (pure jnp value ops on VMEM-resident data)
# ---------------------------------------------------------------------------
def _pad_hw(img):
    """Zero-pad an (H, W, C) value by 1 on both spatial dims.

    Uses concatenate (well-supported in Mosaic) instead of lax.pad.
    """
    h, w, c = img.shape
    zw = jnp.zeros((h, 1, c), img.dtype)
    img = jnp.concatenate([zw, img, zw], axis=1)
    zh = jnp.zeros((1, w + 2, c), img.dtype)
    return jnp.concatenate([zh, img, zh], axis=0)


def _im2col(img_pad, out_h, out_w, k):
    """Fused im2col: (Hp, Wp, C) -> (out_h*out_w, k*k*C), column order (dy, dx, c).

    Built as one channel-axis concat of k*k shifted slices + one collapse reshape,
    so each conv becomes a single wide-K MXU matmul.
    """
    c = img_pad.shape[-1]
    wide = jnp.concatenate(
        [img_pad[dy:dy + out_h, dx:dx + out_w, :]
         for dy in range(k) for dx in range(k)], axis=-1)      # (out_h, out_w, k*k*c)
    return wide.reshape(out_h * out_w, k * k * c)


# ---------------------------------------------------------------------------
# Fused forward-chain kernel (encoder -> dec1 -> neck -> dec2), one image / step
# ---------------------------------------------------------------------------
def _fused_chain_kernel(xs2d_ref, enc_w_ref, enc_b_ref,
                        dec1_w_ref, dec1_b_ref,
                        neck_wf_ref, neck_wo_ref, neck_b_ref,
                        dec2_w_ref, dec2_b_ref,
                        out1_ref, out2_ref, *, hh, wh, cenc):
    m = hh * wh

    # -- encoder: 3x3 stride-2 pad-1 conv, rewritten as a 2x2 stride-1 conv over a
    #    space-to-depth input; single (m, 16*Cin) x (16*Cin, Cenc) bf16 MXU matmul.
    xs2d = xs2d_ref[...]                                   # (hh+1, wh+1, 4*Cin) bf16
    p_enc = _im2col(xs2d, hh, wh, 2)                       # (m, 16*Cin) bf16
    feat = jnp.dot(p_enc, enc_w_ref[...], preferred_element_type=jnp.float32)
    feat = jnp.maximum(feat + enc_b_ref[...], 0.0)         # f32 bias+ReLU epilogue
    feat_pad = _pad_hw(feat.reshape(hh, wh, cenc).astype(jnp.bfloat16))

    # -- shared 3x3 im2col of the padded encoder features (reused by dec1 + neck)
    p_feat = _im2col(feat_pad, hh, wh, 3)                  # (m, 9*cenc) bf16

    # -- decoder1 (Cout=1): VPU multiply + lane reduce, f32 throughout so the
    #    low-res alpha that feeds the bilinear upsample stays full precision.
    out1 = jnp.sum(p_feat.astype(jnp.float32) * dec1_w_ref[...],
                   axis=-1, keepdims=True) + dec1_b_ref[...]      # (m, 1) f32
    out1_img = out1.reshape(hh, wh, 1)
    out1_ref[...] = out1_img
    out1_pad = _pad_hw(out1_img)                            # (hh+2, wh+2, 1) f32

    # -- neck: fused concat(feat, out1) 3x3 conv + ReLU.  Feature path = one
    #    K=9*cenc bf16 MXU matmul; the single out1 channel is a 9-tap f32 VPU
    #    outer-product accumulate (keeps the MXU contraction wide).
    acc = jnp.dot(p_feat, neck_wf_ref[...], preferred_element_type=jnp.float32)
    wo = neck_wo_ref[...]                                   # (9, cenc) f32
    for dy in range(3):
        for dx in range(3):
            t = dy * 3 + dx
            patch = out1_pad[dy:dy + hh, dx:dx + wh, :].reshape(m, 1)   # f32
            acc = acc + patch * wo[t:t + 1]                 # (m,1)*(1,cenc) on VPU
    neck = jnp.maximum(acc + neck_b_ref[...], 0.0)          # (m, cenc) f32
    neck_pad = _pad_hw(neck.reshape(hh, wh, cenc).astype(jnp.bfloat16))

    # -- decoder2 (Cout=1): same VPU reduction pattern.
    p_neck = _im2col(neck_pad, hh, wh, 3)                   # (m, 9*cenc) bf16
    out2 = jnp.sum(p_neck.astype(jnp.float32) * dec2_w_ref[...],
                   axis=-1, keepdims=True) + dec2_b_ref[...]
    out2_ref[...] = out2.reshape(hh, wh, 1)


def _fused_forward_pallas(x_nhwc, params):
    """Run encoder -> dec1 -> neck -> dec2 in one pallas_call, grid over batch."""
    N, H, W, Cin = x_nhwc.shape
    assert H % 2 == 0 and W % 2 == 0, "even spatial dims expected"
    Hh, Wh = H // 2, W // 2
    Cenc = params["enc_w"].shape[-1]

    # XLA prologue: pad + space-to-depth of the raw input (one cheap pass) so the
    # stride-2 conv becomes a stride-1 2x2 conv the fused-im2col kernel handles.
    xp = jnp.pad(x_nhwc, ((0, 0), (1, 1), (1, 1), (0, 0)))         # (N, H+2, W+2, C)
    y = xp.reshape(N, Hh + 1, 2, Wh + 1, 2, Cin)
    xs2d = jnp.transpose(y, (0, 1, 3, 2, 4, 5)).reshape(
        N, Hh + 1, Wh + 1, 4 * Cin).astype(jnp.bfloat16)

    # Weight packing (tiny, done once by XLA).  Orderings match _im2col's (t, c).
    w_pad = jnp.pad(params["enc_w"], ((0, 1), (0, 1), (0, 0), (0, 0)))  # (4,4,C,Cenc)
    enc_w2 = jnp.transpose(w_pad.reshape(2, 2, 2, 2, Cin, Cenc),
                           (0, 2, 1, 3, 4, 5)).reshape(16 * Cin, Cenc)
    enc_w2 = enc_w2.astype(jnp.bfloat16)
    enc_b = params["enc_b"].reshape(1, Cenc).astype(jnp.float32)
    dec1_w = params["dec1_w"].reshape(1, 9 * Cenc).astype(jnp.float32)
    dec1_b = params["dec1_b"].reshape(1, 1).astype(jnp.float32)
    neck_wf = params["neck_w"][:, :, :Cenc, :].reshape(9 * Cenc, Cenc)
    neck_wf = neck_wf.astype(jnp.bfloat16)
    neck_wo = params["neck_w"][:, :, Cenc, :].reshape(9, Cenc).astype(jnp.float32)
    neck_b = params["neck_b"].reshape(1, Cenc).astype(jnp.float32)
    dec2_w = params["dec2_w"].reshape(1, 9 * Cenc).astype(jnp.float32)
    dec2_b = params["dec2_b"].reshape(1, 1).astype(jnp.float32)

    def const_spec(arr):
        return pl.BlockSpec(arr.shape, lambda n: (0, 0))

    kernel = functools.partial(_fused_chain_kernel, hh=Hh, wh=Wh, cenc=Cenc)
    out1_lr, out2 = pl.pallas_call(
        kernel,
        out_shape=(jax.ShapeDtypeStruct((N, Hh, Wh, 1), jnp.float32),
                   jax.ShapeDtypeStruct((N, Hh, Wh, 1), jnp.float32)),
        grid=(N,),
        in_specs=[
            pl.BlockSpec((_SQUEEZED, Hh + 1, Wh + 1, 4 * Cin),
                         lambda n: (n, 0, 0, 0)),
            const_spec(enc_w2), const_spec(enc_b),
            const_spec(dec1_w), const_spec(dec1_b),
            const_spec(neck_wf), const_spec(neck_wo), const_spec(neck_b),
            const_spec(dec2_w), const_spec(dec2_b),
        ],
        out_specs=[
            pl.BlockSpec((_SQUEEZED, Hh, Wh, 1), lambda n: (n, 0, 0, 0)),
            pl.BlockSpec((_SQUEEZED, Hh, Wh, 1), lambda n: (n, 0, 0, 0)),
        ],
        compiler_params=pltpu.CompilerParams(
            dimension_semantics=("parallel",)),
    )(xs2d, enc_w2, enc_b, dec1_w, dec1_b, neck_wf, neck_wo, neck_b,
      dec2_w, dec2_b)
    return out1_lr, out2


# ---------------------------------------------------------------------------
# Bilinear resize (PyTorch align_corners=False), grid over images
# ---------------------------------------------------------------------------
def _make_interp_matrix(out_size, in_size):
    """Row-stochastic bilinear interp matrix, PyTorch align_corners=False."""
    scale = in_size / out_size
    dst = jnp.arange(out_size, dtype=jnp.float32)
    src = jnp.clip((dst + 0.5) * scale - 0.5, 0.0, in_size - 1.0)
    i0 = jnp.floor(src).astype(jnp.int32)
    i1 = jnp.minimum(i0 + 1, in_size - 1)
    w1 = src - i0.astype(jnp.float32)
    w0 = 1.0 - w1
    oh0 = jax.nn.one_hot(i0, in_size, dtype=jnp.float32)
    oh1 = jax.nn.one_hot(i1, in_size, dtype=jnp.float32)
    return w0[:, None] * oh0 + w1[:, None] * oh1                  # (out, in)


def _resize_kernel(x_ref, rh_ref, rwt_ref, o_ref):
    """Separable bilinear resize for one image: o = Rh @ X @ Rw^T (bf16 MXU)."""
    x = x_ref[...].astype(jnp.bfloat16)
    t = jnp.dot(rh_ref[...], x, preferred_element_type=jnp.float32)
    o_ref[...] = jnp.dot(t.astype(jnp.bfloat16), rwt_ref[...],
                         preferred_element_type=jnp.float32)


def bilinear_resize_pallas(x_nhw, out_h, out_w):
    """(N, Hi, Wi) f32 -> (N, out_h, out_w) f32; one parallel grid step per image
    (flatten N*C into the leading axis for multi-channel inputs)."""
    N, Hi, Wi = x_nhw.shape
    rh = _make_interp_matrix(out_h, Hi).astype(jnp.bfloat16)      # (out_h, Hi)
    rwt = _make_interp_matrix(out_w, Wi).T.astype(jnp.bfloat16)   # (Wi, out_w)
    return pl.pallas_call(
        _resize_kernel,
        out_shape=jax.ShapeDtypeStruct((N, out_h, out_w), jnp.float32),
        grid=(N,),
        in_specs=[pl.BlockSpec((_SQUEEZED, Hi, Wi), lambda n: (n, 0, 0)),
                  pl.BlockSpec(rh.shape, lambda n: (0, 0)),
                  pl.BlockSpec(rwt.shape, lambda n: (0, 0))],
        out_specs=pl.BlockSpec((_SQUEEZED, out_h, out_w), lambda n: (n, 0, 0)),
        compiler_params=pltpu.CompilerParams(
            dimension_semantics=("parallel",)),
    )(x_nhw, rh, rwt)


# ---------------------------------------------------------------------------
# SimpleShareEncoderDecoder forward
# ---------------------------------------------------------------------------
def init_params(key, c_in=4, c_enc=16):
    ks = jax.random.split(key, 8)
    s = 0.1
    return {
        "enc_w": s * jax.random.normal(ks[0], (3, 3, c_in, c_enc), jnp.float32),
        "enc_b": s * jax.random.normal(ks[1], (c_enc,), jnp.float32),
        "dec1_w": s * jax.random.normal(ks[2], (3, 3, c_enc, 1), jnp.float32),
        "dec1_b": s * jax.random.normal(ks[3], (1,), jnp.float32),
        "neck_w": s * jax.random.normal(ks[4], (3, 3, c_enc + 1, c_enc), jnp.float32),
        "neck_b": s * jax.random.normal(ks[5], (c_enc,), jnp.float32),
        "dec2_w": s * jax.random.normal(ks[6], (3, 3, c_enc, 1), jnp.float32),
        "dec2_b": s * jax.random.normal(ks[7], (1,), jnp.float32),
    }


def simple_share_encoder_decoder_forward(x_nchw, params):
    # External interface is NCHW (PyTorch convention); conv hot path is NHWC.
    x_nhwc = jnp.transpose(x_nchw, (0, 2, 3, 1))

    # encoder -> decoder1 -> neck -> decoder2, fused in one pallas_call.
    out1_lr, out2 = _fused_forward_pallas(x_nhwc, params)

    # out1 = F.interpolate(out1, ori_input.shape[-2:], 'bilinear',
    #                      align_corners=False)
    ori_h, ori_w = x_nchw.shape[-2], x_nchw.shape[-1]
    out1_up = bilinear_resize_pallas(jnp.squeeze(out1_lr, axis=-1), ori_h, ori_w)

    out1_nchw = out1_up[:, None, :, :]                    # (N, 1, H, W)
    out2_nchw = jnp.transpose(out2, (0, 3, 1, 2))         # (N, 1, H/2, W/2)
    return out1_nchw, out2_nchw


# ---------------------------------------------------------------------------
# Pure-XLA f32 reference of the same synthetic architecture (correctness check)
# ---------------------------------------------------------------------------
def _reference_forward(x_nchw, params):
    dn = ("NHWC", "HWIO", "NHWC")

    def conv(x, w, b, stride, relu):
        y = lax.conv_general_dilated(x, w, (stride, stride), ((1, 1), (1, 1)),
                                     dimension_numbers=dn) + b
        return jnp.maximum(y, 0.0) if relu else y

    x = jnp.transpose(x_nchw, (0, 2, 3, 1))
    feat = conv(x, params["enc_w"], params["enc_b"], 2, True)
    out1 = conv(feat, params["dec1_w"], params["dec1_b"], 1, False)
    fused = conv(jnp.concatenate([feat, out1], axis=-1),
                 params["neck_w"], params["neck_b"], 1, True)
    out2 = conv(fused, params["dec2_w"], params["dec2_b"], 1, False)
    out1_nchw = jnp.transpose(out1, (0, 3, 1, 2))
    out2_nchw = jnp.transpose(out2, (0, 3, 1, 2))
    rh = _make_interp_matrix(x_nchw.shape[2], out1.shape[1])
    rw = _make_interp_matrix(x_nchw.shape[3], out1.shape[2])
    out1_up = jnp.einsum("oh,nchw,pw->ncop", rh, out1_nchw, rw)
    return out1_up, out2_nchw


if __name__ == "__main__":
    key = jax.random.PRNGKey(0)
    k_x, k_p = jax.random.split(key)

    N, C, H, W = 2, 4, 16, 16
    x = jax.random.normal(k_x, (N, C, H, W), jnp.float32)   # NCHW like PyTorch
    params = init_params(k_p, c_in=C, c_enc=16)

    fwd = jax.jit(simple_share_encoder_decoder_forward)
    out1, out2 = fwd(x, params)
    jax.block_until_ready((out1, out2))

    assert out1.shape == (N, 1, H, W), out1.shape            # upsampled to ori size
    assert out2.shape == (N, 1, H // 2, W // 2), out2.shape  # feature resolution
    assert bool(jnp.all(jnp.isfinite(out1))) and bool(jnp.all(jnp.isfinite(out2)))

    # Numerical check vs f32 XLA reference (encoder/neck matmuls + resize are
    # bf16-in/f32-acc; dec1/dec2 paths are f32).
    ref1, ref2 = _reference_forward(x, params)
    assert float(jnp.max(jnp.abs(out1 - ref1))) < 5e-2
    assert float(jnp.max(jnp.abs(out2 - ref2))) < 5e-2

    print("KERNEL_OK")
</pallas_src>

<mosaic_0001>
module attributes {stable_mosaic.version = 11 : i64} {
  func.func @_fused_chain_kernel(%arg0: i32, %arg1: memref<1x9x9x16xbf16, #tpu.memory_space<vmem>>, %arg2: memref<64x16xbf16, #tpu.memory_space<vmem>>, %arg3: memref<1x16xf32, #tpu.memory_space<vmem>>, %arg4: memref<1x144xf32, #tpu.memory_space<vmem>>, %arg5: memref<1x1xf32, #tpu.memory_space<vmem>>, %arg6: memref<144x16xbf16, #tpu.memory_space<vmem>>, %arg7: memref<9x16xf32, #tpu.memory_space<vmem>>, %arg8: memref<1x16xf32, #tpu.memory_space<vmem>>, %arg9: memref<1x144xf32, #tpu.memory_space<vmem>>, %arg10: memref<1x1xf32, #tpu.memory_space<vmem>>, %arg11: memref<1x8x8x1xf32, #tpu.memory_space<vmem>>, %arg12: memref<1x8x8x1xf32, #tpu.memory_space<vmem>>) attributes {dimension_semantics = [#tpu.dimension_semantics<parallel>], iteration_bounds = array<i64: 2>, scalar_prefetch = 0 : i64, scratch_operands = 0 : i64, tpu.core_type = #tpu.core_type<tc>, window_params = [{transform_indices = @transform_0, window_bounds = array<i64: 1, 9, 9, 16>}, {pipeline_mode = #tpu.pipeline_mode<synchronous>, transform_indices = @transform_1, window_bounds = array<i64: 64, 16>}, {pipeline_mode = #tpu.pipeline_mode<synchronous>, transform_indices = @transform_2, window_bounds = array<i64: 1, 16>}, {pipeline_mode = #tpu.pipeline_mode<synchronous>, transform_indices = @transform_3, window_bounds = array<i64: 1, 144>}, {pipeline_mode = #tpu.pipeline_mode<synchronous>, transform_indices = @transform_4, window_bounds = array<i64: 1, 1>}, {pipeline_mode = #tpu.pipeline_mode<synchronous>, transform_indices = @transform_5, window_bounds = array<i64: 144, 16>}, {pipeline_mode = #tpu.pipeline_mode<synchronous>, transform_indices = @transform_6, window_bounds = array<i64: 9, 16>}, {pipeline_mode = #tpu.pipeline_mode<synchronous>, transform_indices = @transform_7, window_bounds = array<i64: 1, 16>}, {pipeline_mode = #tpu.pipeline_mode<synchronous>, transform_indices = @transform_8, window_bounds = array<i64: 1, 144>}, {pipeline_mode = #tpu.pipeline_mode<synchronous>, transform_indices = @transform_9, window_bounds = array<i64: 1, 1>}, {transform_indices = @transform_10, window_bounds = array<i64: 1, 8, 8, 1>}, {transform_indices = @transform_11, window_bounds = array<i64: 1, 8, 8, 1>}]} {
    %c0 = arith.constant 0 : index
    %c0_0 = arith.constant 0 : index
    %c0_1 = arith.constant 0 : index
    %c0_2 = arith.constant 0 : index
    %0 = vector.load %arg1[%c0, %c0_0, %c0_1, %c0_2] : memref<1x9x9x16xbf16, #tpu.memory_space<vmem>>, vector<1x9x9x16xbf16>
    %1 = vector.shape_cast %0 : vector<1x9x9x16xbf16> to vector<9x9x16xbf16>
    %2 = vector.extract_strided_slice %1 {offsets = [0, 0, 0], sizes = [8, 8, 16], strides = [1, 1, 1]} : vector<9x9x16xbf16> to vector<8x8x16xbf16>
    %3 = vector.extract_strided_slice %1 {offsets = [0, 1, 0], sizes = [8, 8, 16], strides = [1, 1, 1]} : vector<9x9x16xbf16> to vector<8x8x16xbf16>
    %4 = vector.extract_strided_slice %1 {offsets = [1, 0, 0], sizes = [8, 8, 16], strides = [1, 1, 1]} : vector<9x9x16xbf16> to vector<8x8x16xbf16>
    %5 = vector.extract_strided_slice %1 {offsets = [1, 1, 0], sizes = [8, 8, 16], strides = [1, 1, 1]} : vector<9x9x16xbf16> to vector<8x8x16xbf16>
    %6 = tpu.concatenate %2, %3, %4, %5 in 2 : vector<8x8x16xbf16>, vector<8x8x16xbf16>, vector<8x8x16xbf16>, vector<8x8x16xbf16> -> vector<8x8x64xbf16>
    %7 = vector.shape_cast %6 : vector<8x8x64xbf16> to vector<64x64xbf16>
    %c0_3 = arith.constant 0 : index
    %c0_4 = arith.constant 0 : index
    %8 = vector.load %arg2[%c0_3, %c0_4] : memref<64x16xbf16, #tpu.memory_space<vmem>>, vector<64x16xbf16>
    %cst = arith.constant dense<0.000000e+00> : vector<64x16xf32>
    %9 = tpu.matmul %7, %8, %cst {dimension_numbers = #tpu.dot_dimension_numbers<[1], [0], [0], [1], [0, 0, 1, 1], [], []>} : vector<64x64xbf16>, vector<64x16xbf16>, vector<64x16xf32> -> vector<64x16xf32>
    %c0_5 = arith.constant 0 : index
    %c0_6 = arith.constant 0 : index
    %10 = vector.load %arg3[%c0_5, %c0_6] : memref<1x16xf32, #tpu.memory_space<vmem>>, vector<1x16xf32>
    %11 = vector.broadcast %10 : vector<1x16xf32> to vector<64x16xf32>
    %12 = arith.addf %9, %11 : vector<64x16xf32>
    %cst_7 = arith.constant 0.000000e+00 : f32
    %13 = vector.broadcast %cst_7 : f32 to vector<64x16xf32>
    %14 = arith.maximumf %12, %13 : vector<64x16xf32>
    %15 = vector.shape_cast %14 : vector<64x16xf32> to vector<8x8x16xf32>
    %16 = arith.truncf %15 : vector<8x8x16xf32> to vector<8x8x16xbf16>
    %cst_8 = arith.constant 0.000000e+00 : bf16
    %17 = vector.broadcast %cst_8 : bf16 to vector<8x1x16xbf16>
    %18 = tpu.concatenate %17, %16, %17 in 1 : vector<8x1x16xbf16>, vector<8x8x16xbf16>, vector<8x1x16xbf16> -> vector<8x10x16xbf16>
    %cst_9 = arith.constant 0.000000e+00 : bf16
    %19 = vector.broadcast %cst_9 : bf16 to vector<1x10x16xbf16>
    %20 = tpu.concatenate %19, %18, %19 in 0 : vector<1x10x16xbf16>, vector<8x10x16xbf16>, vector<1x10x16xbf16> -> vector<10x10x16xbf16>
    %21 = vector.extract_strided_slice %20 {offsets = [0, 0, 0], sizes = [8, 8, 16], strides = [1, 1, 1]} : vector<10x10x16xbf16> to vector<8x8x16xbf16>
    %22 = vector.extract_strided_slice %20 {offsets = [0, 1, 0], sizes = [8, 8, 16], strides = [1, 1, 1]} : vector<10x10x16xbf16> to vector<8x8x16xbf16>
    %23 = vector.extract_strided_slice %20 {offsets = [0, 2, 0], sizes = [8, 8, 16], strides = [1, 1, 1]} : vector<10x10x16xbf16> to vector<8x8x16xbf16>
    %24 = vector.extract_strided_slice %20 {offsets = [1, 0, 0], sizes = [8, 8, 16], strides = [1, 1, 1]} : vector<10x10x16xbf16> to vector<8x8x16xbf16>
    %25 = vector.extract_strided_slice %20 {offsets = [1, 1, 0], sizes = [8, 8, 16], strides = [1, 1, 1]} : vector<10x10x16xbf16> to vector<8x8x16xbf16>
    %26 = vector.extract_strided_slice %20 {offsets = [1, 2, 0], sizes = [8, 8, 16], strides = [1, 1, 1]} : vector<10x10x16xbf16> to vector<8x8x16xbf16>
    %27 = vector.extract_strided_slice %20 {offsets = [2, 0, 0], sizes = [8, 8, 16], strides = [1, 1, 1]} : vector<10x10x16xbf16> to vector<8x8x16xbf16>
    %28 = vector.extract_strided_slice %20 {offsets = [2, 1, 0], sizes = [8, 8, 16], strides = [1, 1, 1]} : vector<10x10x16xbf16> to vector<8x8x16xbf16>
    %29 = vector.extract_strided_slice %20 {offsets = [2, 2, 0], sizes = [8, 8, 16], strides = [1, 1, 1]} : vector<10x10x16xbf16> to vector<8x8x16xbf16>
    %30 = tpu.concatenate %21, %22, %23, %24, %25, %26, %27, %28, %29 in 2 : vector<8x8x16xbf16>, vector<8x8x16xbf16>, vector<8x8x16xbf16>, vector<8x8x16xbf16>, vector<8x8x16xbf16>, vector<8x8x16xbf16>, vector<8x8x16xbf16>, vector<8x8x16xbf16>, vector<8x8x16xbf16> -> vector<8x8x144xbf16>
    %31 = vector.shape_cast %30 : vector<8x8x144xbf16> to vector<64x144xbf16>
    %32 = arith.extf %31 : vector<64x144xbf16> to vector<64x144xf32>
    %c0_10 = arith.constant 0 : index
    %c0_11 = arith.constant 0 : index
    %33 = vector.load %arg4[%c0_10, %c0_11] : memref<1x144xf32, #tpu.memory_space<vmem>>, vector<1x144xf32>
    %34 = vector.broadcast %33 : vector<1x144xf32> to vector<64x144xf32>
    %35 = arith.mulf %32, %34 : vector<64x144xf32>
    %cst_12 = arith.constant dense<0.000000e+00> : vector<64xf32>
    %36 = vector.multi_reduction <add>, %35, %cst_12 [1] : vector<64x144xf32> to vector<64xf32>
    %37 = vector.shape_cast %36 : vector<64xf32> to vector<64x1xf32>
    %c0_13 = arith.constant 0 : index
    %c0_14 = arith.constant 0 : index
    %38 = vector.load %arg5[%c0_13, %c0_14] : memref<1x1xf32, #tpu.memory_space<vmem>>, vector<1x1xf32>
    %39 = vector.broadcast %38 : vector<1x1xf32> to vector<64x1xf32>
    %40 = arith.addf %37, %39 : vector<64x1xf32>
    %41 = vector.shape_cast %40 : vector<64x1xf32> to vector<8x8x1xf32>
    %c0_15 = arith.constant 0 : index
    %c0_16 = arith.constant 0 : index
    %c0_17 = arith.constant 0 : index
    %c0_18 = arith.constant 0 : index
    %42 = vector.load %arg11[%c0_15, %c0_16, %c0_17, %c0_18] : memref<1x8x8x1xf32, #tpu.memory_space<vmem>>, vector<1x8x8x1xf32>
    %43 = vector.shape_cast %42 : vector<1x8x8x1xf32> to vector<8x8x1xf32>
    %44 = vector.shape_cast %41 : vector<8x8x1xf32> to vector<1x8x8x1xf32>
    tpu.vector_store %arg11[%c0_15, %c0_16, %c0_17, %c0_18], %44 {strides = array<i32>} : memref<1x8x8x1xf32, #tpu.memory_space<vmem>>, vector<1x8x8x1xf32>,
    %cst_19 = arith.constant 0.000000e+00 : f32
    %45 = vector.broadcast %cst_19 : f32 to vector<8x1x1xf32>
    %46 = tpu.concatenate %45, %41, %45 in 1 : vector<8x1x1xf32>, vector<8x8x1xf32>, vector<8x1x1xf32> -> vector<8x10x1xf32>
    %cst_20 = arith.constant 0.000000e+00 : f32
    %47 = vector.broadcast %cst_20 : f32 to vector<1x10x1xf32>
    %48 = tpu.concatenate %47, %46, %47 in 0 : vector<1x10x1xf32>, vector<8x10x1xf32>, vector<1x10x1xf32> -> vector<10x10x1xf32>
    %c0_21 = arith.constant 0 : index
    %c0_22 = arith.constant 0 : index
    %49 = vector.load %arg6[%c0_21, %c0_22] : memref<144x16xbf16, #tpu.memory_space<vmem>>, vector<144x16xbf16>
    %cst_23 = arith.constant dense<0.000000e+00> : vector<64x16xf32>
    %50 = tpu.matmul %31, %49, %cst_23 {dimension_numbers = #tpu.dot_dimension_numbers<[1], [0], [0], [1], [0, 0, 1, 1], [], []>} : vector<64x144xbf16>, vector<144x16xbf16>, vector<64x16xf32> -> vector<64x16xf32>
    %c0_24 = arith.constant 0 : index
    %c0_25 = arith.constant 0 : index
    %51 = vector.load %arg7[%c0_24, %c0_25] : memref<9x16xf32, #tpu.memory_space<vmem>>, vector<9x16xf32>
    %52 = vector.extract_strided_slice %48 {offsets = [0, 0, 0], sizes = [8, 8, 1], strides = [1, 1, 1]} : vector<10x10x1xf32> to vector<8x8x1xf32>
    %53 = vector.shape_cast %52 : vector<8x8x1xf32> to vector<64x1xf32>
    %54 = vector.extract_strided_slice %51 {offsets = [0, 0], sizes = [1, 16], strides = [1, 1]} : vector<9x16xf32> to vector<1x16xf32>
    %55 = vector.broadcast %53 : vector<64x1xf32> to vector<64x16xf32>
    %56 = vector.broadcast %54 : vector<1x16xf32> to vector<64x16xf32>
    %57 = arith.mulf %55, %56 : vector<64x16xf32>
    %58 = arith.addf %50, %57 : vector<64x16xf32>
    %59 = vector.extract_strided_slice %48 {offsets = [0, 1, 0], sizes = [8, 8, 1], strides = [1, 1, 1]} : vector<10x10x1xf32> to vector<8x8x1xf32>
    %60 = vector.shape_cast %59 : vector<8x8x1xf32> to vector<64x1xf32>
    %61 = vector.extract_strided_slice %51 {offsets = [1, 0], sizes = [1, 16], strides = [1, 1]} : vector<9x16xf32> to vector<1x16xf32>
    %62 = vector.broadcast %60 : vector<64x1xf32> to vector<64x16xf32>
    %63 = vector.broadcast %61 : vector<1x16xf32> to vector<64x16xf32>
    %64 = arith.mulf %62, %63 : vector<64x16xf32>
    %65 = arith.addf %58, %64 : vector<64x16xf32>
    %66 = vector.extract_strided_slice %48 {offsets = [0, 2, 0], sizes = [8, 8, 1], strides = [1, 1, 1]} : vector<10x10x1xf32> to vector<8x8x1xf32>
    %67 = vector.shape_cast %66 : vector<8x8x1xf32> to vector<64x1xf32>
    %68 = vector.extract_strided_slice %51 {offsets = [2, 0], sizes = [1, 16], strides = [1, 1]} : vector<9x16xf32> to vector<1x16xf32>
    %69 = vector.broadcast %67 : vector<64x1xf32> to vector<64x16xf32>
    %70 = vector.broadcast %68 : vector<1x16xf32> to vector<64x16xf32>
    %71 = arith.mulf %69, %70 : vector<64x16xf32>
    %72 = arith.addf %65, %71 : vector<64x16xf32>
    %73 = vector.extract_strided_slice %48 {offsets = [1, 0, 0], sizes = [8, 8, 1], strides = [1, 1, 1]} : vector<10x10x1xf32> to vector<8x8x1xf32>
    %74 = vector.shape_cast %73 : vector<8x8x1xf32> to vector<64x1xf32>
    %75 = vector.extract_strided_slice %51 {offsets = [3, 0], sizes = [1, 16], strides = [1, 1]} : vector<9x16xf32> to vector<1x16xf32>
    %76 = vector.broadcast %74 : vector<64x1xf32> to vector<64x16xf32>
    %77 = vector.broadcast %75 : vector<1x16xf32> to vector<64x16xf32>
    %78 = arith.mulf %76, %77 : vector<64x16xf32>
    %79 = arith.addf %72, %78 : vector<64x16xf32>
    %80 = vector.extract_strided_slice %48 {offsets = [1, 1, 0], sizes = [8, 8, 1], strides = [1, 1, 1]} : vector<10x10x1xf32> to vector<8x8x1xf32>
    %81 = vector.shape_cast %80 : vector<8x8x1xf32> to vector<64x1xf32>
    %82 = vector.extract_strided_slice %51 {offsets = [4, 0], sizes = [1, 16], strides = [1, 1]} : vector<9x16xf32> to vector<1x16xf32>
    %83 = vector.broadcast %81 : vector<64x1xf32> to vector<64x16xf32>
    %84 = vector.broadcast %82 : vector<1x16xf32> to vector<64x16xf32>
    %85 = arith.mulf %83, %84 : vector<64x16xf32>
    %86 = arith.addf %79, %85 : vector<64x16xf32>
    %87 = vector.extract_strided_slice %48 {offsets = [1, 2, 0], sizes = [8, 8, 1], strides = [1, 1, 1]} : vector<10x10x1xf32> to vector<8x8x1xf32>
    %88 = vector.shape_cast %87 : vector<8x8x1xf32> to vector<64x1xf32>
    %89 = vector.extract_strided_slice %51 {offsets = [5, 0], sizes = [1, 16], strides = [1, 1]} : vector<9x16xf32> to vector<1x16xf32>
    %90 = vector.broadcast %88 : vector<64x1xf32> to vector<64x16xf32>
    %91 = vector.broadcast %89 : vector<1x16xf32> to vector<64x16xf32>
    %92 = arith.mulf %90, %91 : vector<64x16xf32>
    %93 = arith.addf %86, %92 : vector<64x16xf32>
    %94 = vector.extract_strided_slice %48 {offsets = [2, 0, 0], sizes = [8, 8, 1], strides = [1, 1, 1]} : vector<10x10x1xf32> to vector<8x8x1xf32>
    %95 = vector.shape_cast %94 : vector<8x8x1xf32> to vector<64x1xf32>
    %96 = vector.extract_strided_slice %51 {offsets = [6, 0], sizes = [1, 16], strides = [1, 1]} : vector<9x16xf32> to vector<1x16xf32>
    %97 = vector.broadcast %95 : vector<64x1xf32> to vector<64x16xf32>
    %98 = vector.broadcast %96 : vector<1x16xf32> to vector<64x16xf32>
    %99 = arith.mulf %97, %98 : vector<64x16xf32>
    %100 = arith.addf %93, %99 : vector<64x16xf32>
    %101 = vector.extract_strided_slice %48 {offsets = [2, 1, 0], sizes = [8, 8, 1], strides = [1, 1, 1]} : vector<10x10x1xf32> to vector<8x8x1xf32>
    %102 = vector.shape_cast %101 : vector<8x8x1xf32> to vector<64x1xf32>
    %103 = vector.extract_strided_slice %51 {offsets = [7, 0], sizes = [1, 16], strides = [1, 1]} : vector<9x16xf32> to vector<1x16xf32>
    %104 = vector.broadcast %102 : vector<64x1xf32> to vector<64x16xf32>
    %105 = vector.broadcast %103 : vector<1x16xf32> to vector<64x16xf32>
    %106 = arith.mulf %104, %105 : vector<64x16xf32>
    %107 = arith.addf %100, %106 : vector<64x16xf32>
    %108 = vector.extract_strided_slice %48 {offsets = [2, 2, 0], sizes = [8, 8, 1], strides = [1, 1, 1]} : vector<10x10x1xf32> to vector<8x8x1xf32>
    %109 = vector.shape_cast %108 : vector<8x8x1xf32> to vector<64x1xf32>
    %110 = vector.extract_strided_slice %51 {offsets = [8, 0], sizes = [1, 16], strides = [1, 1]} : vector<9x16xf32> to vector<1x16xf32>
    %111 = vector.broadcast %109 : vector<64x1xf32> to vector<64x16xf32>
    %112 = vector.broadcast %110 : vector<1x16xf32> to vector<64x16xf32>
    %113 = arith.mulf %111, %112 : vector<64x16xf32>
    %114 = arith.addf %107, %113 : vector<64x16xf32>
    %c0_26 = arith.constant 0 : index
    %c0_27 = arith.constant 0 : index
    %115 = vector.load %arg8[%c0_26, %c0_27] : memref<1x16xf32, #tpu.memory_space<vmem>>, vector<1x16xf32>
    %116 = vector.broadcast %115 : vector<1x16xf32> to vector<64x16xf32>
    %117 = arith.addf %114, %116 : vector<64x16xf32>
    %cst_28 = arith.constant 0.000000e+00 : f32
    %118 = vector.broadcast %cst_28 : f32 to vector<64x16xf32>
    %119 = arith.maximumf %117, %118 : vector<64x16xf32>
    %120 = vector.shape_cast %119 : vector<64x16xf32> to vector<8x8x16xf32>
    %121 = arith.truncf %120 : vector<8x8x16xf32> to vector<8x8x16xbf16>
    %cst_29 = arith.constant 0.000000e+00 : bf16
    %122 = vector.broadcast %cst_29 : bf16 to vector<8x1x16xbf16>
    %123 = tpu.concatenate %122, %121, %122 in 1 : vector<8x1x16xbf16>, vector<8x8x16xbf16>, vector<8x1x16xbf16> -> vector<8x10x16xbf16>
    %cst_30 = arith.constant 0.000000e+00 : bf16
    %124 = vector.broadcast %cst_30 : bf16 to vector<1x10x16xbf16>
    %125 = tpu.concatenate %124, %123, %124 in 0 : vector<1x10x16xbf16>, vector<8x10x16xbf16>, vector<1x10x16xbf16> -> vector<10x10x16xbf16>
    %126 = vector.extract_strided_slice %125 {offsets = [0, 0, 0], sizes = [8, 8, 16], strides = [1, 1, 1]} : vector<10x10x16xbf16> to vector<8x8x16xbf16>
    %127 = vector.extract_strided_slice %125 {offsets = [0, 1, 0], sizes = [8, 8, 16], strides = [1, 1, 1]} : vector<10x10x16xbf16> to vector<8x8x16xbf16>
    %128 = vector.extract_strided_slice %125 {offsets = [0, 2, 0], sizes = [8, 8, 16], strides = [1, 1, 1]} : vector<10x10x16xbf16> to vector<8x8x16xbf16>
    %129 = vector.extract_strided_slice %125 {offsets = [1, 0, 0], sizes = [8, 8, 16], strides = [1, 1, 1]} : vector<10x10x16xbf16> to vector<8x8x16xbf16>
    %130 = vector.extract_strided_slice %125 {offsets = [1, 1, 0], sizes = [8, 8, 16], strides = [1, 1, 1]} : vector<10x10x16xbf16> to vector<8x8x16xbf16>
    %131 = vector.extract_strided_slice %125 {offsets = [1, 2, 0], sizes = [8, 8, 16], strides = [1, 1, 1]} : vector<10x10x16xbf16> to vector<8x8x16xbf16>
    %132 = vector.extract_strided_slice %125 {offsets = [2, 0, 0], sizes = [8, 8, 16], strides = [1, 1, 1]} : vector<10x10x16xbf16> to vector<8x8x16xbf16>
    %133 = vector.extract_strided_slice %125 {offsets = [2, 1, 0], sizes = [8, 8, 16], strides = [1, 1, 1]} : vector<10x10x16xbf16> to vector<8x8x16xbf16>
    %134 = vector.extract_strided_slice %125 {offsets = [2, 2, 0], sizes = [8, 8, 16], strides = [1, 1, 1]} : vector<10x10x16xbf16> to vector<8x8x16xbf16>
    %135 = tpu.concatenate %126, %127, %128, %129, %130, %131, %132, %133, %134 in 2 : vector<8x8x16xbf16>, vector<8x8x16xbf16>, vector<8x8x16xbf16>, vector<8x8x16xbf16>, vector<8x8x16xbf16>, vector<8x8x16xbf16>, vector<8x8x16xbf16>, vector<8x8x16xbf16>, vector<8x8x16xbf16> -> vector<8x8x144xbf16>
    %136 = vector.shape_cast %135 : vector<8x8x144xbf16> to vector<64x144xbf16>
    %137 = arith.extf %136 : vector<64x144xbf16> to vector<64x144xf32>
    %c0_31 = arith.constant 0 : index
    %c0_32 = arith.constant 0 : index
    %138 = vector.load %arg9[%c0_31, %c0_32] : memref<1x144xf32, #tpu.memory_space<vmem>>, vector<1x144xf32>
    %139 = vector.broadcast %138 : vector<1x144xf32> to vector<64x144xf32>
    %140 = arith.mulf %137, %139 : vector<64x144xf32>
    %cst_33 = arith.constant dense<0.000000e+00> : vector<64xf32>
    %141 = vector.multi_reduction <add>, %140, %cst_33 [1] : vector<64x144xf32> to vector<64xf32>
    %142 = vector.shape_cast %141 : vector<64xf32> to vector<64x1xf32>
    %c0_34 = arith.constant 0 : index
    %c0_35 = arith.constant 0 : index
    %143 = vector.load %arg10[%c0_34, %c0_35] : memref<1x1xf32, #tpu.memory_space<vmem>>, vector<1x1xf32>
    %144 = vector.broadcast %143 : vector<1x1xf32> to vector<64x1xf32>
    %145 = arith.addf %142, %144 : vector<64x1xf32>
    %146 = vector.shape_cast %145 : vector<64x1xf32> to vector<8x8x1xf32>
    %c0_36 = arith.constant 0 : index
    %c0_37 = arith.constant 0 : index
    %c0_38 = arith.constant 0 : index
    %c0_39 = arith.constant 0 : index
    %147 = vector.load %arg12[%c0_36, %c0_37, %c0_38, %c0_39] : memref<1x8x8x1xf32, #tpu.memory_space<vmem>>, vector<1x8x8x1xf32>
    %148 = vector.shape_cast %147 : vector<1x8x8x1xf32> to vector<8x8x1xf32>
    %149 = vector.shape_cast %146 : vector<8x8x1xf32> to vector<1x8x8x1xf32>
    tpu.vector_store %arg12[%c0_36, %c0_37, %c0_38, %c0_39], %149 {strides = array<i32>} : memref<1x8x8x1xf32, #tpu.memory_space<vmem>>, vector<1x8x8x1xf32>,
    return
  }
  func.func @transform_0(%arg0: i32) -> (i32, i32, i32, i32) {
    %c0_i32 = arith.constant 0 : i32
    %c0_i32_0 = arith.constant 0 : i32
    %c0_i32_1 = arith.constant 0 : i32
    %c0_i32_2 = arith.constant 0 : i32
    return %arg0, %c0_i32, %c0_i32_0, %c0_i32_1 : i32, i32, i32, i32
  }
  func.func @transform_1(%arg0: i32) -> (i32, i32) {
    %c0_i32 = arith.constant 0 : i32
    %c0_i32_0 = arith.constant 0 : i32
    %c0_i32_1 = arith.constant 0 : i32
    return %c0_i32, %c0_i32_0 : i32, i32
  }
  func.func @transform_2(%arg0: i32) -> (i32, i32) {
    %c0_i32 = arith.constant 0 : i32
    %c0_i32_0 = arith.constant 0 : i32
    %c0_i32_1 = arith.constant 0 : i32
    return %c0_i32, %c0_i32_0 : i32, i32
  }
  func.func @transform_3(%arg0: i32) -> (i32, i32) {
    %c0_i32 = arith.constant 0 : i32
    %c0_i32_0 = arith.constant 0 : i32
    %c0_i32_1 = arith.constant 0 : i32
    return %c0_i32, %c0_i32_0 : i32, i32
  }
  func.func @transform_4(%arg0: i32) -> (i32, i32) {
    %c0_i32 = arith.constant 0 : i32
    %c0_i32_0 = arith.constant 0 : i32
    %c0_i32_1 = arith.constant 0 : i32
    return %c0_i32, %c0_i32_0 : i32, i32
  }
  func.func @transform_5(%arg0: i32) -> (i32, i32) {
    %c0_i32 = arith.constant 0 : i32
    %c0_i32_0 = arith.constant 0 : i32
    %c0_i32_1 = arith.constant 0 : i32
    return %c0_i32, %c0_i32_0 : i32, i32
  }
  func.func @transform_6(%arg0: i32) -> (i32, i32) {
    %c0_i32 = arith.constant 0 : i32
    %c0_i32_0 = arith.constant 0 : i32
    %c0_i32_1 = arith.constant 0 : i32
    return %c0_i32, %c0_i32_0 : i32, i32
  }
  func.func @transform_7(%arg0: i32) -> (i32, i32) {
    %c0_i32 = arith.constant 0 : i32
    %c0_i32_0 = arith.constant 0 : i32
    %c0_i32_1 = arith.constant 0 : i32
    return %c0_i32, %c0_i32_0 : i32, i32
  }
  func.func @transform_8(%arg0: i32) -> (i32, i32) {
    %c0_i32 = arith.constant 0 : i32
    %c0_i32_0 = arith.constant 0 : i32
    %c0_i32_1 = arith.constant 0 : i32
    return %c0_i32, %c0_i32_0 : i32, i32
  }
  func.func @transform_9(%arg0: i32) -> (i32, i32) {
    %c0_i32 = arith.constant 0 : i32
    %c0_i32_0 = arith.constant 0 : i32
    %c0_i32_1 = arith.constant 0 : i32
    return %c0_i32, %c0_i32_0 : i32, i32
  }
  func.func @transform_10(%arg0: i32) -> (i32, i32, i32, i32) {
    %c0_i32 = arith.constant 0 : i32
    %c0_i32_0 = arith.constant 0 : i32
    %c0_i32_1 = arith.constant 0 : i32
    %c0_i32_2 = arith.constant 0 : i32
    return %arg0, %c0_i32, %c0_i32_0, %c0_i32_1 : i32, i32, i32, i32
  }
  func.func @transform_11(%arg0: i32) -> (i32, i32, i32, i32) {
    %c0_i32 = arith.constant 0 : i32
    %c0_i32_0 = arith.constant 0 : i32
    %c0_i32_1 = arith.constant 0 : i32
    %c0_i32_2 = arith.constant 0 : i32
    return %arg0, %c0_i32, %c0_i32_0, %c0_i32_1 : i32, i32, i32, i32
  }
}

module attributes {stable_mosaic.version = 11 : i64} {
  func.func @_resize_kernel(%arg0: i32, %arg1: memref<1x8x8xf32, #tpu.memory_space<vmem>>, %arg2: memref<16x8xbf16, #tpu.memory_space<vmem>>, %arg3: memref<8x16xbf16, #tpu.memory_space<vmem>>, %arg4: memref<1x16x16xf32, #tpu.memory_space<vmem>>) attributes {dimension_semantics = [#tpu.dimension_semantics<parallel>], iteration_bounds = array<i64: 2>, scalar_prefetch = 0 : i64, scratch_operands = 0 : i64, tpu.core_type = #tpu.core_type<tc>, window_params = [{transform_indices = @transform_0, window_bounds = array<i64: 1, 8, 8>}, {pipeline_mode = #tpu.pipeline_mode<synchronous>, transform_indices = @transform_1, window_bounds = array<i64: 16, 8>}, {pipeline_mode = #tpu.pipeline_mode<synchronous>, transform_indices = @transform_2, window_bounds = array<i64: 8, 16>}, {transform_indices = @transform_3, window_bounds = array<i64: 1, 16, 16>}]} {
    %c0 = arith.constant 0 : index
    %c0_0 = arith.constant 0 : index
    %c0_1 = arith.constant 0 : index
    %0 = vector.load %arg1[%c0, %c0_0, %c0_1] : memref<1x8x8xf32, #tpu.memory_space<vmem>>, vector<1x8x8xf32>
    %1 = vector.shape_cast %0 : vector<1x8x8xf32> to vector<8x8xf32>
    %2 = arith.truncf %1 : vector<8x8xf32> to vector<8x8xbf16>
    %c0_2 = arith.constant 0 : index
    %c0_3 = arith.constant 0 : index
    %3 = vector.load %arg2[%c0_2, %c0_3] : memref<16x8xbf16, #tpu.memory_space<vmem>>, vector<16x8xbf16>
    %cst = arith.constant dense<0.000000e+00> : vector<16x8xf32>
    %4 = tpu.matmul %3, %2, %cst {dimension_numbers = #tpu.dot_dimension_numbers<[1], [0], [0], [1], [0, 0, 1, 1], [], []>} : vector<16x8xbf16>, vector<8x8xbf16>, vector<16x8xf32> -> vector<16x8xf32>
    %5 = arith.truncf %4 : vector<16x8xf32> to vector<16x8xbf16>
    %c0_4 = arith.constant 0 : index
    %c0_5 = arith.constant 0 : index
    %6 = vector.load %arg3[%c0_4, %c0_5] : memref<8x16xbf16, #tpu.memory_space<vmem>>, vector<8x16xbf16>
    %cst_6 = arith.constant dense<0.000000e+00> : vector<16x16xf32>
    %7 = tpu.matmul %5, %6, %cst_6 {dimension_numbers = #tpu.dot_dimension_numbers<[1], [0], [0], [1], [0, 0, 1, 1], [], []>} : vector<16x8xbf16>, vector<8x16xbf16>, vector<16x16xf32> -> vector<16x16xf32>
    %c0_7 = arith.constant 0 : index
    %c0_8 = arith.constant 0 : index
    %c0_9 = arith.constant 0 : index
    %8 = vector.load %arg4[%c0_7, %c0_8, %c0_9] : memref<1x16x16xf32, #tpu.memory_space<vmem>>, vector<1x16x16xf32>
    %9 = vector.shape_cast %8 : vector<1x16x16xf32> to vector<16x16xf32>
    %10 = vector.shape_cast %7 : vector<16x16xf32> to vector<1x16x16xf32>
    tpu.vector_store %arg4[%c0_7, %c0_8, %c0_9], %10 {strides = array<i32>} : memref<1x16x16xf32, #tpu.memory_space<vmem>>, vector<1x16x16xf32>,
    return
  }
  func.func @transform_0(%arg0: i32) -> (i32, i32, i32) {
    %c0_i32 = arith.constant 0 : i32
    %c0_i32_0 = arith.constant 0 : i32
    %c0_i32_1 = arith.constant 0 : i32
    return %arg0, %c0_i32, %c0_i32_0 : i32, i32, i32
  }
  func.func @transform_1(%arg0: i32) -> (i32, i32) {
    %c0_i32 = arith.constant 0 : i32
    %c0_i32_0 = arith.constant 0 : i32
    %c0_i32_1 = arith.constant 0 : i32
    return %c0_i32, %c0_i32_0 : i32, i32
  }
  func.func @transform_2(%arg0: i32) -> (i32, i32) {
    %c0_i32 = arith.constant 0 : i32
    %c0_i32_0 = arith.constant 0 : i32
    %c0_i32_1 = arith.constant 0 : i32
    return %c0_i32, %c0_i32_0 : i32, i32
  }
  func.func @transform_3(%arg0: i32) -> (i32, i32, i32) {
    %c0_i32 = arith.constant 0 : i32
    %c0_i32_0 = arith.constant 0 : i32
    %c0_i32_1 = arith.constant 0 : i32
    return %arg0, %c0_i32, %c0_i32_0 : i32, i32, i32
  }
}

</mosaic_0001>

<bundles_post_ra>
// kernel: squeeze.2
= control target key start
LH: loop header
LB: loop body
LE: loop exit
PB: predicated region body
PF: predicated region fallthrough
CT: control target
= control target key end

     0   :  { %vm16_vm0 = vcmask 130048   ;;  %s61_s0 = inlined_call_operand.vmem [shape: f32[3,3,16], index: 0, kind: input, shape index: {}]   ;;  %s62_s1 = inlined_call_operand.vmem [shape: f32[9,16], index: 1, kind: output, shape index: {}]  }
   0x1   :  { %v29_v0 = vld [vmem:[%s61_s0 + $0x8] sm:$0xf]  ;;  %v30_v1 = vld [vmem:[%s61_s0 + $0x4] sm:$0xf]  ;;  %v13_v2 = vld [vmem:[%s61_s0] sm:$0xf] }
   0x2   :  { %8 = vst [vmem:[#allocation0 + $0x10] sm:$0xf] %v29_v0  ;;  %12 = vst [vmem:[#allocation0 + $0x8] sm:$0xf] %v30_v1 }
   0x3   :  { %14 = vst [vmem:[#allocation0] sm:$0xf] %v13_v2 }
   0x9   :  { %v19_v4 = vld [vmem:[#allocation0 + $0x8] sm:$0x7]   ;;  %v24_v5 = vld [vmem:[#allocation0 + $0x10] sm:$0x7]  }
   0xa   :  { %v15_v3 = vld [vmem:[#allocation0] sm:$0x7]   ;;  %31 = vst.msk [vmem:[%s62_s1 + $0x3] sm:$0x7] %vm16_vm0, %v19_v4   ;;  %32 = vst.msk [vmem:[%s62_s1 + $0x6] sm:$0x7] %vm16_vm0, %v24_v5  }
   0xb   :  { %17 = vst.msk [vmem:[%s62_s1] sm:$0x7] %vm16_vm0, %v15_v3  }

// kernel: simple_share_encoder_decoder_forward.3
= control target key start
LH: loop header
LB: loop body
LE: loop exit
PB: predicated region body
PF: predicated region fallthrough
CT: control target
= control target key end

     0   :  { %8 = vsyncpa [#allocation3], 0  ;;  %s626_s0 = inlined_call_operand.vmem [shape: f32[2,8,8], index: 0, kind: input, shape index: {}]   ;;  %s627_s1 = inlined_call_operand.vmem [shape: bf16[16,8], index: 1, kind: input, shape index: {}]   ;;  %s628_s2 = inlined_call_operand.vmem [shape: bf16[8,16], index: 2, kind: input, shape index: {}]   ;;  %s629_s3 = inlined_call_operand.hbm [shape: f32[2,16,16], index: 3, kind: output, shape index: {}]  }
   0x1   :  { %10 = vsyncpa [#allocation3 + $0x1], 0  ;;  %s517_s12 = smov 0   ;;  %s519_s13 = smov 0  }
   0x2   :  { %s521_s14 = smov 0   ;;  %s523_s15 = smov 0  }
   0x3 LB: > { %s538_s16 = sadd.s32 4294967295, %s490_s15   ;;  %s353_s17 = sadd.s32 4294967294, %s490_s15   ;;  %s490_s15 = sphi %s523_s15, %s635_s15   ;;  %s486_s14 = sphi %s521_s14, %s634_s14   ;;  %s482_s13 = sphi %s519_s13, %s633_s13   ;;  %s478_s12 = sphi %s517_s12, %s632_s12  }
   0x4   : > { %s542_s18 = sadd.s32 1, %s490_s15   ;;  %s91_s19 = sadd.s32 1, %s486_s14 }
   0x5   : > { %s88_s20 = ssub.s32 %s490_s15, %s542_s18  ;;  %p101_p0 = scmp.ne.s32.totalorder %s486_s14, %s482_s13 }
   0x6   : > { %p89_p1 = scmp.eq.s32.totalorder %s88_s20, 0  ;;  %p102_p2 = scmp.eq.s32.totalorder %s538_s16, 1 }
   0x7   : > { %p107_p3 = scmp.ne.s32.totalorder %s482_s13, %s478_s12  ;;  %p108_p4 = scmp.eq.s32.totalorder %s353_s17, 1 }
   0x8   : > { %s553_s21 = scalar_select %p89_p1, %s486_s14, %s91_s19  }
   0x9   : > { %p555_p5 = por %p102_p2, %p101_p0  ;;  %p559_p6 = por %p108_p4, %p107_p3 }
   0xa   : > { %p356_p7 = scmp.ge.s32.totalorder %s490_s15, 1  ;;  %p139_p8 = scmp.lt.s32.totalorder %s490_s15, 3 }
   0xc   : > { %p140_p9 = pnand %p356_p7, %p139_p8 }
   0xd   : > { %p162_p10 = scmp.lt.s32.totalorder (!%p140_p9), %s538_s16, 1  ;;  %v492_v0 = vmov (!%p140_p9), 0.0   ;;  %vm493_vm0 = vmmov (!%p140_p9), 0   ;;  %vm180_vm1 = vcmask (!%p140_p9), 1043456   ;;  %v427_v4 = vld [vmem:[%s627_s1] sm:$0xff] (!%p140_p9)   ;;  %vm176_vm2 = vcmask (!%p140_p9), 64512  }
   0xe   : > { %143 = sbr.rel (%p140_p9) target bundleno = 477 (0x1dd), region = 32  ;;  %372 = vmatprep.subr.bf16.mxu0 (!%p140_p9), %v492_v0  ;;  %374 = vmatprep.mubr.msk.bf16.mxu0 (!%p140_p9), %vm493_vm0, %v492_v0  ;;  %v226_v5 = vld [vmem:[%s628_s2] sm:$0xf] (!%p140_p9)  ;;  %s159_s6 = sand.u32 (!%p140_p9), 1, %s482_s13   ;;  %vm274_vm3 = vcmask (!%p140_p9), 130048  }
   0xf   : > { %378 = vmatprep.subr.bf16.mxu1 (!%p140_p9), %v492_v0  ;;  %380 = vmatprep.mubr.msk.bf16.mxu1 (!%p140_p9), %vm493_vm0, %v492_v0  ;;  %v231_v6 = vsel (!%p140_p9), %vm180_vm1, %v226_v5, 0  ;;  %s357_s7 = sshll.u32 (!%p140_p9), %s159_s6, 4  ;;  %s367_s10 = sshll.u32 (!%p140_p9), %s538_s16, 8 }
  0x10   : > { %379 = vmatpush3.bf16.msra.mxu1 (!%p140_p9), %v231_v6  ;;  %s161_s8 = scalar_lea.vmem (!%p140_p9), [#allocation2], %s357_s7  ;;  %s583_s19 = scalar_lea.hbm (!%p140_p9), %s629_s3, %s367_s10 }
  0x11   : > { %s291_s9 = sshll.u32 (!%p140_p9), %s161_s8, 4  ;;  %s585_s20 = scalar_lea.sflag (!%p140_p9), [#allocation3], %s159_s6  ;;  %s578_s9 = int_to_ptr.vmem [resolvable:$true] %s291_s9 }
  0x15   : > { %s163_s24 = scalar_select %p162_p10, %s538_s16, 1 }
  0x16   : > { %s428_s16 = scalar_lea.vmem %s578_s9, 256 }
  0x17   : > { %s358_s25 = sshll.u32 %s163_s24, 3  ;;  %p429_p11 = scmp.ne.s32.totalorder %s578_s9, %s428_s16 }
  0x18   : > { %s165_s28 = scalar_lea.vmem %s626_s0, %s358_s25  ;;  %s494_s24 = smov [#allocation2]  }
  0x19   : > { %v167_v1 = vld [vmem:[%s165_s28] sm:$0xff]  ;;  %p430_p12 = pnand %p429_p11, %p555_p5  ;;  %s432_s25 = sshll.u32 %s494_s24, 4  ;;  %s433_s25 = int_to_ptr.vmem [resolvable:$false] %s432_s25 }
  0x1a   : > { %v168_v2 = vpack.c.bf16 %v167_v1, %v167_v1  ;;  %s434_s26 = scalar_lea.vmem %s433_s25, 512  ;;  %p435_p0 = scmp.lt.s32.totalorder %s578_s9, %s433_s25 }
  0x1b   : > { %p431_p13 = pneg %p430_p12  ;;  %p436_p1 = scmp.lt.s32.totalorder %s434_s26, %s428_s16 }
  0x1c   : > { %v182_v3 = vsel %vm180_vm1, %v168_v2, 0 }
  0x1d   : > { %373 = vmatpush3.bf16.msra.mxu0 %v182_v3  ;;  %p437_p2 = por %p436_p1, %p435_p0 }
  0x1f   : > { %p438_p3 = pnand %p437_p2, %p431_p13 }
  0x20   : > { %375 = vmatmul.mubr.msk.bf16.vlgmr.msra.gmra.mrb[0].mxu0 %vm176_vm2, %v427_v4 }
  0xf3   : > { %v218_v7 = vpop.f32.mrb[0].mxu0 }
  0xf4   : > { %v376_v8 = vpop.f32.mrb[1].mxu0 }
  0xf5   : > { %v221_v9 = vpop.f32.mrb[2].mxu0 }
  0xf6   : > { %v225_v10 = vpack.c.bf16 %v221_v9, %v218_v7  ;;  %v377_v11 = vpop.f32.mrb[3].mxu0 }
  0xf8   : > { %381 = vmatmul.mubr.msk.bf16.vlgmr.msra.gmra.mrb[0].mxu1 %vm176_vm2, %v225_v10 }
 0x1cb   : > { %v267_v12 = vpop.f32.mrb[0].mxu1 }
 0x1cc   : > { %275 = vst.msk [vmem:[%s161_s8] sm:$0xff] %vm274_vm3, %v267_v12  ;;  %v382_v13 = vpop.f32.mrb[1].mxu1 }
 0x1cd   : > { %v270_v14 = vpop.f32.mrb[2].mxu1 }
 0x1ce   : > { %276 = vst.msk [vmem:[%s161_s8 + $0x8] sm:$0xff] %vm274_vm3, %v270_v14  ;;  %v383_v15 = vpop.f32.mrb[3].mxu1 }
 0x1cf   : > { %441 = shalt.err (!%p438_p3)
}
 0x1d0   : > { %s442_s27 = scalar_lea.hbm %s583_s19, 256  ;;  %s446_s30 = scalar_lea.hbm %s629_s3, 512 }
 0x1d1   : > { %p443_p4 = scmp.ne.s32.totalorder %s583_s19, %s442_s27  ;;  %p447_p9 = scmp.lt.u32.totalorder %s583_s19, %s629_s3 }
 0x1d2   : > { %p448_p10 = scmp.lt.u32.totalorder %s446_s30, %s442_s27  ;;  %p450_p12 = scmp.lt.u32.totalorder %s442_s27, %s583_s19 }
 0x1d3   : > { %p444_p7 = pnand %p443_p4, %p555_p5 }
 0x1d4   : > { %p449_p11 = por %p448_p10, %p447_p9 }
 0x1d5   : > { %p445_p8 = pneg %p444_p7 }
 0x1d6   : > { %p451_p13 = por %p450_p12, %p449_p11 }
 0x1d8   : > { %p452_p0 = pnand %p451_p13, %p445_p8 }
 0x1da   : > { %455 = shalt.err (!%p452_p0)
}
 0x1db   : > { %s495_s6 = smov 128   ;;  %s496_s7 = smov 8  }
 0x1dc   : > { %384 = dma.vmem_to_hbm [thread:$0]  (%p555_p5), %s578_s9, 256, %s583_s19, %s585_s20, %s495_s6, %s495_s6, %s496_s7  }
 0x1dd PF: > { %p390_p1 = scmp.ge.s32.totalorder %s490_s15, 2  ;;  %s306_s8 = sand.u32 1, %s478_s12  }
 0x1de   : > { %s307_s10 = scalar_lea.sflag [#allocation3], %s306_s8 }
 0x1df   : > { %p387_p2 = pnand %p390_p1, %p559_p6 }
 0x1e1   : > { %473 = dma.done.wait (!%p387_p2), %s307_s10, 256  }
 0x1e2   : > { %475 = vsyncadd (!%p387_p2), %s307_s10, 4294967040  ;;  %p13_p3 = scmp.ge.s32.totalorder %s542_s18, 4   ;;  %s632_s12 = smov %s482_s13 }
 0x1e3   : > { %s633_s13 = smov %s486_s14  ;;  %s634_s14 = smov %s553_s21 }
 0x1e4   : > { %s635_s15 = smov %s542_s18  ;;  %15 = sbr.rel (!%p13_p3) target bundleno = 3 (0x3), region = 67 }
 0x1eb   :  { %312 = vsyncpa [#allocation3], 1 }
 0x1ec   :  { %314 = vsyncpa [#allocation3 + $0x1], 1 }

// kernel: simple_share_encoder_decoder_forward.2
= control target key start
LH: loop header
LB: loop body
LE: loop exit
PB: predicated region body
PF: predicated region fallthrough
CT: control target
= control target key end

     0   :  { %s2772_s21 = smov 0   ;;  %s3968_s0 = inlined_call_operand.vmem [shape: bf16[2,9,9,16], index: 0, kind: input, shape index: {}]   ;;  %s3969_s1 = inlined_call_operand.vmem [shape: bf16[64,16], index: 1, kind: input, shape index: {}]   ;;  %s3970_s2 = inlined_call_operand.vmem [shape: f32[1,16], index: 2, kind: input, shape index: {}]   ;;  %s3971_s3 = inlined_call_operand.vmem [shape: f32[1,144], index: 3, kind: input, shape index: {}]   ;;  %s3972_s4 = inlined_call_operand.<no memory space> [shape: f32[1,1], index: 4, kind: input, shape index: {}]   ;;  %s3973_s5 = inlined_call_operand.vmem [shape: bf16[144,16], index: 5, kind: input, shape index: {}]   ;;  %s3974_s6 = inlined_call_operand.vmem [shape: f32[9,16], index: 6, kind: input, shape index: {}]   ;;  %s3975_s7 = inlined_call_operand.vmem [shape: f32[1,16], index: 7, kind: input, shape index: {}]   ;;  %s3976_s8 = inlined_call_operand.vmem [shape: f32[1,144], index: 8, kind: input, shape index: {}]   ;;  %s3977_s10 = inlined_call_operand.vmem [shape: f32[2,8,8,1], index: 10, kind: output, shape index: {0}]   ;;  %s3978_s11 = inlined_call_operand.vmem [shape: f32[2,8,8,1], index: 11, kind: output, shape index: {1}]   ;;  %s3979_s9 = inlined_call_operand.<no memory space> [shape: f32[1,1], index: 9, kind: input, shape index: {}]  }
   0x1   :  { %v17_v0 = vstv %s3972_s4  ;;  %v19_v1 = vstv %s3979_s9 }
   0x2   :  { %18 = vst [vmem:[#allocation2] sm:$0x1] %v17_v0  ;;  %20 = vst [vmem:[#allocation3] sm:$0x1] %v19_v1 }
   0x3 LB: > { %s2507_s22 = sadd.s32 4294967295, %s2695_s21   ;;  %p2511_p0 = scmp.ge.s32.totalorder %s2695_s21, 1  ;;  %s2695_s21 = sphi %s2772_s21, %s26_s21  }
   0x4   : > { %p344_p1 = scmp.lt.s32.totalorder %s2695_s21, 3 }
   0x6   : > { %p345_p2 = pnand %p2511_p0, %p344_p1 }
   0x7   : > { %p389_p3 = scmp.lt.s32.totalorder (!%p345_p2), %s2507_s22, 1  ;;  %v2676_v2 = vld [vmem:[%s3969_s1] sm:$0xff] (!%p345_p2)   ;;  %v2677_v3 = vld [vmem:[%s3969_s1 + $0x8] sm:$0xff] (!%p345_p2)   ;;  %s2697_s29 = smov (!%p345_p2), 32   ;;  %v2678_v38 = vld [vmem:[%s3969_s1 + $0x10] sm:$0xff] (!%p345_p2)   ;;  %vm587_vm0 = vcmask (!%p345_p2), 130048  }
   0x8   : > { %348 = sbr.rel (%p345_p2) target bundleno = 1315 (0x523), region = 60  ;;  %2600 = vmatprep.subr.bf16.mxu0 (!%p345_p2), %v2676_v2  ;;  %v2679_v40 = vld [vmem:[%s3969_s1 + $0x18] sm:$0xff] (!%p345_p2)   ;;  %s2698_s15 = smov (!%p345_p2), 16   ;;  %vm612_vm1 = vcmask (!%p345_p2), 261120   ;;  %vm629_vm2 = vcmask (!%p345_p2), 392192   ;;  %vm705_vm3 = vcmask (!%p345_p2), 523264  }
   0x9   : > { %2601 = vmatpush3.bf16.msra.mxu0 (!%p345_p2), %v2676_v2  ;;  %s2699_s16 = smov (!%p345_p2), 48   ;;  %vm863_vm4 = vcmask (!%p345_p2), 1040384   ;;  %vm864_vm5 = vsmask.f32 (!%p345_p2), 256  ;;  %vm874_vm6 = vcmask (!%p345_p2), 1044480   ;;  %s2701_s19 = smov (!%p345_p2), 96  }
   0xa   : > { %2602 = vmatprep.subr.bf16.mxu0 (!%p345_p2), %v2677_v3  ;;  %vm875_vm7 = vsmask.f32 (!%p345_p2), 4352  ;;  %vm2937_vm8 = vmand (!%p345_p2), %vm863_vm4, %vm864_vm5  ;;  %s2702_s20 = smov (!%p345_p2), 80   ;;  %s2703_s4 = smov (!%p345_p2), 64   ;;  %vm1142_vm10 = vcmask (!%p345_p2), 654336   ;;  %vm1176_vm11 = vcmask (!%p345_p2), 916480  }
   0xb   : > { %vm2941_vm9 = vmand (!%p345_p2), %vm874_vm6, %vm875_vm7  ;;  %s2704_s24 = smov (!%p345_p2), 112   ;;  %vm1159_vm12 = vcmask (!%p345_p2), 785408   ;;  %vm1324_vm13 = vcmask (!%p345_p2), 7168   ;;  %vm1596_vm14 = vcmask (!%p345_p2), 1046528   ;;  %vm1672_vm15 = vcmask (!%p345_p2), 1045504  }
   0xd   : > { %2603 = vmatpush3.bf16.msra.mxu0 (!%p345_p2), %v2677_v3 }
   0xe   : > { %2604 = vmatprep.subr.bf16.mxu0 (!%p345_p2), %v2678_v38 }
   0xf   : > { %s3985_s22 = smov (!%p389_p3, %s2507_s22), 1 }
  0x10   : > { %s2634_s23 = smul.u32 72, %s3985_s22  ;;  %s2590_s13 = sshll.u32 %s3985_s22, 6 }
  0x11   : > { %2605 = vmatpush3.bf16.msra.mxu0 %v2678_v38  ;;  %s3378_s18 = scalar_lea.vmem %s3977_s10, %s2590_s13 }
  0x12   : > { %s2792_s28 = scalar_lea.vmem %s3968_s0, %s2634_s23  ;;  %2606 = vmatprep.subr.bf16.mxu0 %v2679_v40 }
  0x13   : > { %v2795_v4 = vld [vmem:[%s2792_s28 + $0x10] sm:$0xf]  ;;  %v410_v5 = vld [vmem:[%s2792_s28 + $0x14] sm:$0x1]  ;;  %v2799_v6 = vld [vmem:[%s2792_s28 + $0x8] sm:$0xf] }
  0x14   : > { %v2526_v7 = vcombine.low %v2795_v4, %v2795_v4  ;;  %v2519_v8 = vcombine.low %v2795_v4, %v410_v5  ;;  %v408_v9 = vld [vmem:[%s2792_s28 + $0xc] sm:$0x1]  ;;  %v2525_v10 = vcombine.low %v2799_v6, %v2799_v6  ;;  %v2808_v11 = vld [vmem:[%s2792_s28 + $0x20] sm:$0xf]  ;;  %v2811_v12 = vld [vmem:[%s2792_s28 + $0x18] sm:$0xf] }
  0x15   : > { %v2518_v13 = vcombine.low %v2799_v6, %v408_v9  ;;  %v2528_v14 = vcombine.low %v2808_v11, %v2808_v11  ;;  %v2527_v15 = vcombine.low %v2811_v12, %v2811_v12  ;;  %v2819_v16 = vld [vmem:[%s2792_s28] sm:$0xf]  ;;  %v406_v17 = vld [vmem:[%s2792_s28 + $0x4] sm:$0x1]  ;;  %v412_v18 = vld [vmem:[%s2792_s28 + $0x1c] sm:$0x1]  ;;  %2607 = vmatpush3.bf16.msra.mxu0 %v2679_v40 }
  0x16   : > { %547 = vrot.lane.b32.xlu1 %v2526_v7, %s2697_s29  ;;  %545 = vrot.lane.b32.xlu0 %v2525_v10, %s2697_s29  ;;  %v478_v19 = vshrl.u32 %v2519_v8, 16  ;;  %v480_v20 = vshll.u32 %v2519_v8, 16  ;;  %v2517_v21 = vcombine.low %v2819_v16, %v406_v17  ;;  %v2520_v22 = vcombine.low %v2811_v12, %v412_v18  ;;  %v414_v23 = vld [vmem:[%s2792_s28 + $0x24] sm:$0x1]  ;;  %v2832_v36 = vld [vmem:[%s2792_s28 + $0x28] sm:$0xf] }
  0x17   : > { %v473_v24 = vshll.u32 %v2518_v13, 16  ;;  %v471_v29 = vshrl.u32 %v2518_v13, 16  ;;  %v2521_v30 = vcombine.low %v2808_v11, %v414_v23  ;;  %v416_v37 = vld [vmem:[%s2792_s28 + $0x2c] sm:$0x1]  ;;  %v2842_v41 = vld [vmem:[%s2792_s28 + $0x38] sm:$0xf]  ;;  %v2529_v7 = vcombine.low %v2832_v36, %v2832_v36 }
  0x18   : > { %v482_v25 = vrot.slane %v480_v20, 1  ;;  %v464_v26 = vshrl.u32 %v2517_v21, 16  ;;  %v466_v27 = vshll.u32 %v2517_v21, 16  ;;  %v487_v28 = vshll.u32 %v2520_v22, 16  ;;  %v420_v42 = vld [vmem:[%s2792_s28 + $0x3c] sm:$0x1] }
  0x19   : > { %v485_v33 = vshrl.u32 %v2520_v22, 16  ;;  %v475_v34 = vrot.slane %v473_v24, 1  ;;  %v2846_v43 = vld [vmem:[%s2792_s28 + $0x30] sm:$0xf]  ;;  %v494_v46 = vshll.u32 %v2521_v30, 16  ;;  %v2522_v47 = vcombine.low %v2832_v36, %v416_v37 }
  0x1a   : > { %551 = vrot.lane.b32.xlu1 %v2528_v14, %s2697_s29  ;;  %549 = vrot.lane.b32.xlu0 %v2527_v15, %s2697_s29  ;;  %v483_v31 = vor.u32 %v482_v25, %v478_v19  ;;  %v468_v32 = vrot.slane %v466_v27, 1  ;;  %v489_v35 = vrot.slane %v487_v28, 1  ;;  %v418_v48 = vld [vmem:[%s2792_s28 + $0x34] sm:$0x1]  ;;  %v492_v49 = vshrl.u32 %v2521_v30, 16 }
  0x1b   : > { %v476_v45 = vor.u32 %v475_v34, %v471_v29  ;;  %v496_v50 = vrot.slane %v494_v46, 1  ;;  %v501_v51 = vshll.u32 %v2522_v47, 16  ;;  %v2524_v52 = vcombine.low %v2842_v41, %v420_v42  ;;  %v422_v2 = vld [vmem:[%s2792_s28 + $0x44] sm:$0x1]  ;;  %v421_v3 = vld [vmem:[%s2792_s28 + $0x40] sm:$0xf] }
  0x1c   : > { %v469_v39 = vor.u32 %v468_v32, %v464_v26  ;;  %v490_v44 = vor.u32 %v489_v35, %v485_v33  ;;  %v2523_v53 = vcombine.low %v2846_v43, %v418_v48  ;;  %v499_v54 = vshrl.u32 %v2522_v47, 16 }
  0x1d   : > { %v497_v55 = vor.u32 %v496_v50, %v492_v49  ;;  %v503_v56 = vrot.slane %v501_v51, 1  ;;  %v515_v57 = vshll.u32 %v2524_v52, 16  ;;  %v513_v59 = vshrl.u32 %v2524_v52, 16 }
  0x1e   : > { %523 = vrot.lane.b32.xlu1 %v483_v31, %s2698_s15  ;;  %519 = vrot.lane.b32.xlu0 %v469_v39, %s2698_s15  ;;  %v508_v58 = vshll.u32 %v2523_v53, 16  ;;  %v506_v62 = vshrl.u32 %v2523_v53, 16  ;;  %v2530_v5 = vcombine.low %v2846_v43, %v2846_v43  ;;  %v2533_v8 = vcombine.low %v421_v3, %v422_v2 }
  0x1f   : > { %v504_v60 = vor.u32 %v503_v56, %v499_v54  ;;  %v517_v61 = vrot.slane %v515_v57, 1  ;;  %v2532_v9 = vcombine.low %v421_v3, %v421_v3  ;;  %v2531_v10 = vcombine.low %v2842_v41, %v2842_v41  ;;  %v2930_v3 = vld [vmem:[%s3970_s2] ss:$0 sm:$0xff] }
  0x20   : > { %v510_v63 = vrot.slane %v508_v58, 1  ;;  %v567_v13 = vshll.u32 %v2533_v8, 16  ;;  %v565_v14 = vshrl.u32 %v2533_v8, 16 }
  0x21   : > { %v518_v0 = vor.u32 %v517_v61, %v513_v59 }
  0x22   : > { %525 = vrot.lane.b32.xlu1 %v490_v44, %s2698_s15  ;;  %521 = vrot.lane.b32.xlu0 %v476_v45, %s2698_s15  ;;  %v511_v1 = vor.u32 %v510_v63, %v506_v62  ;;  %v569_v15 = vrot.slane %v567_v13, 1 }
  0x24   : > { %v570_v17 = vor.u32 %v569_v15, %v565_v14 }
  0x26   : > { %573 = vrot.lane.b32.xlu1 %v483_v31, %s2699_s16  ;;  %571 = vrot.lane.b32.xlu0 %v476_v45, %s2699_s16 }
  0x2a   : > { %577 = vrot.lane.b32.xlu1 %v497_v55, %s2699_s16  ;;  %575 = vrot.lane.b32.xlu0 %v490_v44, %s2699_s16 }
  0x2e   : > { %529 = vrot.lane.b32.xlu1 %v504_v60, %s2698_s15  ;;  %527 = vrot.lane.b32.xlu0 %v497_v55, %s2698_s15 }
  0x32   : > { %533 = vrot.lane.b32.xlu1 %v518_v0, %s2698_s15  ;;  %531 = vrot.lane.b32.xlu0 %v511_v1, %s2698_s15 }
  0x36   : > { %555 = vrot.lane.b32.xlu1 %v2530_v5, %s2697_s29  ;;  %553 = vrot.lane.b32.xlu0 %v2529_v7, %s2697_s29 }
  0x3a   : > { %559 = vrot.lane.b32.xlu1 %v2532_v9, %s2697_s29  ;;  %557 = vrot.lane.b32.xlu0 %v2531_v10, %s2697_s29 }
  0x3e   : > { %581 = vrot.lane.b32.xlu1 %v511_v1, %s2699_s16  ;;  %579 = vrot.lane.b32.xlu0 %v504_v60, %s2699_s16  ;;  %v2700_v1 = vmov 0  }
  0x3f   : > { %v2917_v2 = vrot.slane %v2700_v1, 1  ;;  %2616 = vmatprep.subr.bf16.mxu1 %v2700_v1  ;;  %1524 = vmatprep.subr.bf16.mxu0 %v2700_v1 }
  0x40   : > { %2652 = vset.pattern.permute.xlu1 %v2700_v1  ;;  %2658 = vset.pattern.permute.xlu0 %v2700_v1 }
  0x42   : > { %585 = vrot.lane.b32.xlu1 %v570_v17, %s2699_s16  ;;  %583 = vrot.lane.b32.xlu0 %v518_v0, %s2699_s16 }
  0x46   : > { %941 = vrot.lane.b32.xlu0 %v2917_v2, %s2698_s15 }
  0x4a   : > { %973 = vrot.lane.b32.xlu0 %v2917_v2, %s2697_s29 }
  0x88   : > { %v548_v18 = vpop.permute.xlu1 %547  ;;  %v546_v19 = vpop.permute.xlu0 %545 }
  0x8c   : > { %v552_v20 = vpop.permute.xlu1 %551  ;;  %v550_v21 = vpop.permute.xlu0 %549 }
  0x90   : > { %v524_v22 = vpop.permute.xlu1 %523  ;;  %v520_v23 = vpop.permute.xlu0 %519 }
  0x91   : > { %v590_v26 = vsel %vm587_vm0, %v2819_v16, %v520_v23  ;;  %v596_v32 = vsel %vm587_vm0, %v2795_v4, %v524_v22 }
  0x92   : > { %v614_v30 = vsel %vm612_vm1, %v590_v26, %v546_v19  ;;  %v618_v38 = vsel %vm612_vm1, %v596_v32, %v550_v21 }
  0x94   : > { %v526_v24 = vpop.permute.xlu1 %525  ;;  %v522_v25 = vpop.permute.xlu0 %521 }
  0x95   : > { %v593_v27 = vsel %vm587_vm0, %v2799_v6, %v522_v25  ;;  %v599_v33 = vsel %vm587_vm0, %v2811_v12, %v526_v24 }
  0x96   : > { %v616_v29 = vsel %vm612_vm1, %v593_v27, %v548_v18  ;;  %v620_v35 = vsel %vm612_vm1, %v599_v33, %v552_v20 }
  0x98   : > { %v574_v28 = vpop.permute.xlu1 %573  ;;  %v572_v31 = vpop.permute.xlu0 %571 }
  0x99   : > { %v633_v16 = vsel %vm629_vm2, %v616_v29, %v574_v28  ;;  %v631_v34 = vsel %vm629_vm2, %v614_v30, %v572_v31 }
  0x9a   : > { %v2535_v6 = vcombine.low %v631_v34, %v633_v16 }
  0x9c   : > { %v578_v37 = vpop.permute.xlu1 %577  ;;  %2608 = vmatprep.mubr.msk.bf16.mxu0 %vm705_vm3, %v2535_v6  ;;  %v576_v39 = vpop.permute.xlu0 %575 }
  0x9d   : > { %v637_v40 = vsel %vm629_vm2, %v620_v35, %v578_v37  ;;  %v635_v4 = vsel %vm629_vm2, %v618_v38, %v576_v39 }
  0x9e   : > { %v2536_v42 = vcombine.low %v635_v4, %v637_v40 }
  0xa0   : > { %v530_v44 = vpop.permute.xlu1 %529  ;;  %2609 = vmatmul.mubr.msk.bf16.vlgmr.msra.gmra.mrb[0].mxu0 %vm705_vm3, %v2536_v42  ;;  %v528_v12 = vpop.permute.xlu0 %527 }
  0xa1   : > { %v605_v49 = vsel %vm587_vm0, %v2832_v36, %v530_v44  ;;  %v602_v50 = vsel %vm587_vm0, %v2808_v11, %v528_v12 }
  0xa4   : > { %v534_v45 = vpop.permute.xlu1 %533  ;;  %v532_v46 = vpop.permute.xlu0 %531 }
  0xa5   : > { %v611_v55 = vsel %vm587_vm0, %v2842_v41, %v534_v45  ;;  %v608_v56 = vsel %vm587_vm0, %v2846_v43, %v532_v46 }
  0xa8   : > { %v556_v47 = vpop.permute.xlu1 %555  ;;  %v554_v48 = vpop.permute.xlu0 %553 }
  0xa9   : > { %v624_v53 = vsel %vm612_vm1, %v605_v49, %v556_v47  ;;  %v622_v54 = vsel %vm612_vm1, %v602_v50, %v554_v48 }
  0xac   : > { %v560_v51 = vpop.permute.xlu1 %559  ;;  %v558_v52 = vpop.permute.xlu0 %557 }
  0xad   : > { %v628_v11 = vsel %vm612_vm1, %v611_v55, %v560_v51  ;;  %v626_v60 = vsel %vm612_vm1, %v608_v56, %v558_v52 }
  0xb0   : > { %v582_v57 = vpop.permute.xlu1 %581  ;;  %v580_v58 = vpop.permute.xlu0 %579 }
  0xb1   : > { %v641_v59 = vsel %vm629_vm2, %v624_v53, %v582_v57  ;;  %v639_v36 = vsel %vm629_vm2, %v622_v54, %v580_v58 }
  0xb2   : > { %v2537_v61 = vcombine.low %v639_v36, %v641_v59 }
  0xb4   : > { %v586_v62 = vpop.permute.xlu1 %585  ;;  %v584_v63 = vpop.permute.xlu0 %583  ;;  %2612 = vmatprep.mubr.msk.bf16.mxu0 %vm705_vm3, %v2537_v61 }
  0xb5   : > { %v645_v41 = vsel %vm629_vm2, %v628_v11, %v586_v62  ;;  %v643_v0 = vsel %vm629_vm2, %v626_v60, %v584_v63 }
  0xb6   : > { %v2538_v43 = vcombine.low %v643_v0, %v645_v41 }
  0xb8   : > { %2613 = vmatmul.mubr.msk.bf16.gmra.mrb[4].mxu0 %vm705_vm3, %v2538_v43 }
 0x173   : > { %v2610_v5 = vpop.f32.mrb[0].mxu0 }
 0x174   : > { %v761_v7 = vadd.f32 %v2610_v5, %v2930_v3  ;;  %v752_v8 = vpop.f32.mrb[1].mxu0 }
 0x175   : > { %v753_v9 = vadd.f32 %v2930_v3, %v752_v8  ;;  %v2611_v10 = vpop.f32.mrb[2].mxu0 }
 0x176   : > { %v785_v13 = vmax.f32 %v761_v7, 0.0  ;;  %v764_v14 = vadd.f32 %v2611_v10, %v2930_v3  ;;  %v755_v15 = vpop.f32.mrb[3].mxu0 }
 0x177   : > { %v783_v17 = vmax.f32 %v753_v9, 0.0  ;;  %v756_v18 = vadd.f32 %v2930_v3, %v755_v15 }
 0x178   : > { %v793_v19 = vpack.c.bf16 %v785_v13, %v785_v13  ;;  %v786_v20 = vmax.f32 %v764_v14, 0.0 }
 0x179   : > { %v791_v21 = vpack.c.bf16 %v783_v17, %v783_v17  ;;  %v784_v22 = vmax.f32 %v756_v18, 0.0 }
 0x17a   : > { %v814_v23 = vshrl.u32 %v793_v19, 16  ;;  %v794_v24 = vpack.c.bf16 %v786_v20, %v786_v20  ;;  %v817_v28 = vshll.u32 %v793_v19, 16 }
 0x17b   : > { %v800_v25 = vshrl.u32 %v791_v21, 16  ;;  %v792_v26 = vpack.c.bf16 %v784_v22, %v784_v22  ;;  %v803_v32 = vshll.u32 %v791_v21, 16 }
 0x17c   : > { %v816_v27 = vrot.slane %v814_v23, 7  ;;  %v821_v29 = vshrl.u32 %v794_v24, 16  ;;  %v824_v40 = vshll.u32 %v794_v24, 16 }
 0x17d   : > { %v802_v31 = vrot.slane %v800_v25, 7  ;;  %v807_v33 = vshrl.u32 %v792_v26, 16  ;;  %v810_v38 = vshll.u32 %v792_v26, 16 }
 0x17e   : > { %v819_v16 = vor.u32 %v817_v28, %v816_v27  ;;  %v823_v34 = vrot.slane %v821_v29, 7 }
 0x17f   : > { %v805_v35 = vor.u32 %v803_v32, %v802_v31  ;;  %v809_v37 = vrot.slane %v807_v33, 7 }
 0x180   : > { %v868_v39 = vsel %vm2937_vm8, 0, %v819_v16  ;;  %v826_v44 = vor.u32 %v824_v40, %v823_v34  ;;  %v2681_v40 = vld [vmem:[%s3973_s5 + $0x8] sm:$0xff]  }
 0x181   : > { %v812_v4 = vor.u32 %v810_v38, %v809_v37  ;;  %v2949_v42 = vsel %vm2941_vm9, %v868_v39, 0  ;;  %v866_v12 = vsel %vm2937_vm8, 0, %v805_v35  ;;  %v2680_v35 = vld [vmem:[%s3973_s5] sm:$0xff]  }
 0x182   : > { %1048 = vrot.lane.b32.xlu1 %v2949_v42, %s2701_s19  ;;  %994 = vrot.lane.b32.xlu0 %v2949_v42, %s2699_s16  ;;  %v2964_v47 = vrot.slane %v2949_v42, 1  ;;  %v2968_v48 = vsel %vm2941_vm9, %v866_v12, 0  ;;  %v869_v50 = vsel %vm2937_vm8, 0, %v826_v44  ;;  %v909_v0 = vshll.u32 %v2949_v42, 16 }
 0x183   : > { %v867_v45 = vsel %vm2937_vm8, 0, %v812_v4  ;;  %v2984_v52 = vsel %vm2941_vm9, %v869_v50, 0  ;;  %v966_v55 = vrot.slane %v2968_v48, 1  ;;  %v895_v9 = vshll.u32 %v2968_v48, 16  ;;  %2625 = vmatpush1.bf16.msra.mxu1 %v2680_v35  ;;  %1525 = vmatpush1.bf16.msra.mxu0 %v2680_v35 }
 0x184   : > { %v2961_v46 = vsel %vm2941_vm9, %v867_v45, 0  ;;  %v3003_v41 = vrot.slane %v2984_v52, 1  ;;  %v911_v8 = vrot.slane %v909_v0, 1  ;;  %v907_v15 = vshrl.u32 %v2949_v42, 16  ;;  %2617 = vmatprep.subr.bf16.mxu1 %v2700_v1  ;;  %1526 = vmatprep.subr.bf16.mxu0 %v2700_v1 }
 0x185   : > { %v2971_v49 = vrot.slane %v2961_v46, 1  ;;  %v897_v19 = vrot.slane %v895_v9, 1  ;;  %v916_v20 = vshll.u32 %v2984_v52, 16  ;;  %v893_v25 = vshrl.u32 %v2968_v48, 16 }
 0x186   : > { %979 = vrot.lane.b32.xlu1 %v2964_v47, %s2697_s29  ;;  %990 = vrot.lane.b32.xlu0 %v2968_v48, %s2699_s16  ;;  %v3025_v18 = vor.u32 %v911_v8, %v907_v15  ;;  %v902_v16 = vshll.u32 %v2961_v46, 16  ;;  %v900_v12 = vshrl.u32 %v2961_v46, 16 }
 0x187   : > { %v2557_v51 = vcombine.low %v2971_v49, %v2964_v47  ;;  %v898_v26 = vor.u32 %v897_v19, %v893_v25  ;;  %v918_v27 = vrot.slane %v916_v20, 1  ;;  %2626 = vmatpush1.bf16.msra.mxu1 %v2681_v40  ;;  %1527 = vmatpush1.bf16.msra.mxu0 %v2681_v40 }
 0x188   : > { %v904_v39 = vrot.slane %v902_v16, 1  ;;  %2618 = vmatprep.subr.bf16.mxu1 %v2700_v1  ;;  %1528 = vmatprep.subr.bf16.mxu0 %v2700_v1 }
 0x189   : > { %2573 = vmatprep.mubr.msk.bf16.mxu0 %vm587_vm0, %v2557_v51  ;;  %v2682_v51 = vld [vmem:[%s3973_s5 + $0x10] sm:$0xff]  }
 0x18a   : > { %996 = vrot.lane.b32.xlu1 %v2984_v52, %s2699_s16  ;;  %1034 = vrot.lane.b32.xlu0 %v2964_v47, %s2702_s20  ;;  %v905_v50 = vor.u32 %v904_v39, %v900_v12 }
 0x18b   : > { %v2614_v53 = vpop.f32.mrb[4].mxu0  ;;  %2627 = vmatpush1.bf16.msra.mxu1 %v2682_v51  ;;  %1529 = vmatpush1.bf16.msra.mxu0 %v2682_v51 }
 0x18c   : > { %v768_v54 = vpop.f32.mrb[5].mxu0  ;;  %v777_v58 = vadd.f32 %v2614_v53, %v2930_v3  ;;  %2619 = vmatprep.subr.bf16.mxu1 %v2700_v1  ;;  %1530 = vmatprep.subr.bf16.mxu0 %v2700_v1 }
 0x18d   : > { %v769_v56 = vadd.f32 %v2930_v3, %v768_v54  ;;  %v2615_v57 = vpop.f32.mrb[6].mxu0 }
 0x18e   : > { %1050 = vrot.lane.b32.xlu0 %v2984_v52, %s2701_s19  ;;  %975 = vrot.lane.b32.xlu1 %v966_v55, %s2697_s29  ;;  %v771_v59 = vpop.f32.mrb[7].mxu0  ;;  %v789_v61 = vmax.f32 %v777_v58, 0.0  ;;  %v780_v24 = vadd.f32 %v2615_v57, %v2930_v3 }
 0x18f   : > { %v787_v36 = vmax.f32 %v769_v56, 0.0  ;;  %v2997_v11 = vadd.f32 %v2930_v3, %v771_v59  ;;  %v914_v3 = vshrl.u32 %v2984_v52, 16  ;;  %v2683_v56 = vld [vmem:[%s3973_s5 + $0x18] sm:$0xff]  }
 0x190   : > { %v797_v5 = vpack.c.bf16 %v789_v61, %v789_v61  ;;  %v790_v29 = vmax.f32 %v780_v24, 0.0  ;;  %2628 = vmatpush1.bf16.msra.mxu1 %v2683_v56  ;;  %1531 = vmatpush1.bf16.msra.mxu0 %v2683_v56  ;;  %v2685_v61 = vld [vmem:[%s3973_s5 + $0x28] sm:$0xff]  }
 0x191   : > { %v795_v60 = vpack.c.bf16 %v787_v36, %v787_v36  ;;  %v919_v31 = vor.u32 %v918_v27, %v914_v3  ;;  %v788_v38 = vmax.f32 %v2997_v11, 0.0  ;;  %2620 = vmatprep.subr.bf16.mxu1 %v2700_v1  ;;  %v2684_v36 = vld [vmem:[%s3973_s5 + $0x20] sm:$0xff]   ;;  %1532 = vmatprep.subr.bf16.mxu0 %v2700_v1 }
 0x192   : > { %1030 = vrot.lane.b32.xlu0 %v966_v55, %s2702_s20  ;;  %992 = vrot.lane.b32.xlu1 %v2961_v46, %s2699_s16  ;;  %v842_v13 = vshrl.u32 %v797_v5, 16  ;;  %v845_v23 = vshll.u32 %v797_v5, 16  ;;  %v798_v33 = vpack.c.bf16 %v790_v29, %v790_v29 }
 0x193   : > { %v828_v62 = vshrl.u32 %v795_v60, 16  ;;  %v831_v63 = vshll.u32 %v795_v60, 16  ;;  %v796_v44 = vpack.c.bf16 %v788_v38, %v788_v38 }
 0x194   : > { %v844_v22 = vrot.slane %v842_v13, 7  ;;  %v849_v37 = vshrl.u32 %v798_v33, 16  ;;  %v852_v45 = vshll.u32 %v798_v33, 16  ;;  %2629 = vmatpush1.bf16.msra.mxu1 %v2684_v36  ;;  %1533 = vmatpush1.bf16.msra.mxu0 %v2684_v36 }
 0x195   : > { %v830_v43 = vrot.slane %v828_v62, 7  ;;  %v835_v54 = vshrl.u32 %v796_v44, 16  ;;  %v838_v59 = vshll.u32 %v796_v44, 16  ;;  %2621 = vmatprep.subr.bf16.mxu1 %v2700_v1  ;;  %1534 = vmatprep.subr.bf16.mxu0 %v2700_v1 }
 0x196   : > { %1046 = vrot.lane.b32.xlu0 %v2961_v46, %s2701_s19  ;;  %1036 = vrot.lane.b32.xlu1 %v3003_v41, %s2702_s20  ;;  %v847_v28 = vor.u32 %v845_v23, %v844_v22  ;;  %v851_v4 = vrot.slane %v849_v37, 7 }
 0x197   : > { %v833_v7 = vor.u32 %v831_v63, %v830_v43  ;;  %v837_v57 = vrot.slane %v835_v54, 7  ;;  %v2686_v63 = vld [vmem:[%s3973_s5 + $0x30] sm:$0xff]  }
 0x198   : > { %v872_v32 = vsel %vm2937_vm8, 0, %v847_v28  ;;  %v854_v53 = vor.u32 %v852_v45, %v851_v4  ;;  %2630 = vmatpush1.bf16.msra.mxu1 %v2685_v61  ;;  %1535 = vmatpush1.bf16.msra.mxu0 %v2685_v61 }
 0x199   : > { %v870_v10 = vsel %vm2937_vm8, 0, %v833_v7  ;;  %v3048_v34 = vsel %vm2941_vm9, %v872_v32, 0  ;;  %v840_v60 = vor.u32 %v838_v59, %v837_v57  ;;  %2622 = vmatprep.subr.bf16.mxu1 %v2700_v1  ;;  %1536 = vmatprep.subr.bf16.mxu0 %v2700_v1  ;;  %v2687_v7 = vld [vmem:[%s3973_s5 + $0x38] sm:$0xff]  }
 0x19a   : > { %v3015_v14 = vsel %vm2941_vm9, %v870_v10, 0  ;;  %981 = vrot.lane.b32.xlu0 %v3003_v41, %s2697_s29  ;;  %1032 = vrot.lane.b32.xlu1 %v2971_v49, %s2702_s20  ;;  %v3075_v55 = vrot.slane %v3048_v34, 1  ;;  %v873_v58 = vsel %vm2937_vm8, 0, %v854_v53  ;;  %v937_v5 = vshll.u32 %v3048_v34, 16  ;;  %v2688_v10 = vld [vmem:[%s3973_s5 + $0x40] sm:$0xff]  }
 0x19b   : > { %v3023_v17 = vrot.slane %v3015_v14, 1  ;;  %v3094_v11 = vsel %vm2941_vm9, %v873_v58, 0  ;;  %v871_v62 = vsel %vm2937_vm8, 0, %v840_v60  ;;  %v935_v13 = vshrl.u32 %v3048_v34, 16 }
 0x19c   : > { %v3117_v0 = vsel %vm2941_vm9, %v871_v62, 0  ;;  %2631 = vmatpush1.bf16.msra.mxu1 %v2686_v63  ;;  %1537 = vmatpush1.bf16.msra.mxu0 %v2686_v63  ;;  %v3124_v43 = vrot.slane %v3094_v11, 1  ;;  %v939_v9 = vrot.slane %v937_v5, 1  ;;  %v923_v19 = vshll.u32 %v3015_v14, 16 }
 0x19d   : > { %v2559_v21 = vcombine.low %v3003_v41, %v3023_v17  ;;  %2623 = vmatprep.subr.bf16.mxu1 %v2700_v1  ;;  %1538 = vmatprep.subr.bf16.mxu0 %v2700_v1  ;;  %v3137_v8 = vrot.slane %v3117_v0, 1  ;;  %v921_v22 = vshrl.u32 %v3015_v14, 16  ;;  %v1009_v25 = vshll.u32 %v3094_v11, 16 }
 0x19e   : > { %977 = vrot.lane.b32.xlu0 %v2971_v49, %s2697_s29  ;;  %947 = vrot.lane.b32.xlu1 %v3025_v18, %s2698_s15  ;;  %v940_v15 = vor.u32 %v939_v9, %v935_v13  ;;  %v925_v20 = vrot.slane %v923_v19, 1  ;;  %v1007_v29 = vshrl.u32 %v3094_v11, 16 }
 0x19f   : > { %2574 = vmatprep.mubr.msk.bf16.mxu1 %vm587_vm0, %v2559_v21  ;;  %v930_v21 = vshll.u32 %v3117_v0, 16  ;;  %v1011_v28 = vrot.slane %v1009_v25, 1 }
 0x1a0   : > { %2632 = vmatpush1.bf16.msra.mxu1 %v2687_v7  ;;  %1539 = vmatpush1.bf16.msra.mxu0 %v2687_v7  ;;  %v926_v23 = vor.u32 %v925_v20, %v921_v22  ;;  %v1251_v7 = vlaneseq }
 0x1a1   : > { %2624 = vmatprep.subr.bf16.mxu1 %v2700_v1  ;;  %1540 = vmatprep.subr.bf16.mxu0 %v2700_v1  ;;  %v932_v24 = vrot.slane %v930_v21, 1  ;;  %v1012_v3 = vor.u32 %v1011_v28, %v1007_v29  ;;  %v1249_v29 = vld [vmem:[%s3971_s3] sm:$0x3] }
 0x1a2   : > { %1017 = vrot.lane.b32.xlu0 %v3025_v18, %s2703_s4  ;;  %943 = vrot.lane.b32.xlu1 %v898_v26, %s2698_s15  ;;  %v3218_v21 = vshrl.u32 %v1251_v7, 7 }
 0x1a4   : > { %2633 = vmatpush1.bf16.msra.mxu1 %v2688_v10  ;;  %1541 = vmatpush1.bf16.msra.mxu0 %v2688_v10 }
 0x1a6   : > { %1013 = vrot.lane.b32.xlu0 %v898_v26, %s2703_s4  ;;  %1019 = vrot.lane.b32.xlu1 %v919_v31, %s2703_s4  ;;  %v928_v26 = vshrl.u32 %v3117_v0, 16 }
 0x1a8   : > { %v933_v27 = vor.u32 %v932_v24, %v928_v26 }
 0x1aa   : > { %1066 = vrot.lane.b32.xlu0 %v919_v31, %s2704_s24  ;;  %1056 = vrot.lane.b32.xlu1 %v3048_v34, %s2701_s19 }
 0x1ae   : > { %949 = vrot.lane.b32.xlu0 %v919_v31, %s2698_s15  ;;  %1052 = vrot.lane.b32.xlu1 %v3015_v14, %s2701_s19  ;;  %v942_v31 = vpop.permute.xlu0 %941 }
 0x1af   : > { %v1079_v61 = vsel %vm587_vm0, 0, %v942_v31 }
 0x1b2   : > { %1002 = vrot.lane.b32.xlu0 %v3048_v34, %s2699_s16  ;;  %1015 = vrot.lane.b32.xlu1 %v905_v50, %s2703_s4  ;;  %v974_v32 = vpop.permute.xlu0 %973 }
 0x1b3   : > { %v3208_v5 = vsel %vm612_vm1, %v1079_v61, %v974_v32 }
 0x1b6   : > { %945 = vrot.lane.b32.xlu0 %v905_v50, %s2698_s15  ;;  %987 = vrot.lane.b32.xlu1 %v3075_v55, %s2697_s29 }
 0x1ba   : > { %998 = vrot.lane.b32.xlu0 %v3015_v14, %s2699_s16  ;;  %1004 = vrot.lane.b32.xlu1 %v3094_v11, %s2699_s16 }
 0x1be   : > { %1062 = vrot.lane.b32.xlu0 %v905_v50, %s2704_s24  ;;  %983 = vrot.lane.b32.xlu1 %v3023_v17, %s2697_s29 }
 0x1c2   : > { %1042 = vrot.lane.b32.xlu0 %v3075_v55, %s2702_s20  ;;  %1000 = vrot.lane.b32.xlu1 %v3117_v0, %s2699_s16 }
 0x1c6   : > { %1038 = vrot.lane.b32.xlu0 %v3023_v17, %s2702_s20  ;;  %1044 = vrot.lane.b32.xlu1 %v3124_v43, %s2702_s20 }
 0x1ca   : > { %1054 = vrot.lane.b32.xlu0 %v3117_v0, %s2701_s19  ;;  %1040 = vrot.lane.b32.xlu1 %v3137_v8, %s2702_s20 }
 0x1ce   : > { %985 = vrot.lane.b32.xlu0 %v3137_v8, %s2697_s29  ;;  %1072 = vrot.lane.b32.xlu1 %v940_v15, %s2704_s24 }
 0x1d2   : > { %1025 = vrot.lane.b32.xlu0 %v940_v15, %s2703_s4  ;;  %955 = vrot.lane.b32.xlu1 %v940_v15, %s2698_s15 }
 0x1d6   : > { %1021 = vrot.lane.b32.xlu0 %v926_v23, %s2703_s4  ;;  %1068 = vrot.lane.b32.xlu1 %v926_v23, %s2704_s24 }
 0x1da   : > { %1070 = vrot.lane.b32.xlu0 %v933_v27, %s2704_s24  ;;  %951 = vrot.lane.b32.xlu1 %v926_v23, %s2698_s15 }
 0x1de   : > { %953 = vrot.lane.b32.xlu0 %v933_v27, %s2698_s15  ;;  %1027 = vrot.lane.b32.xlu1 %v1012_v3, %s2703_s4 }
 0x1e2   : > { %1058 = vrot.lane.b32.xlu0 %v3094_v11, %s2701_s19  ;;  %1023 = vrot.lane.b32.xlu1 %v933_v27, %s2703_s4  ;;  %v3227_v27 = vsub.s32 1, %v3218_v21 }
 0x1e6   : > { %1074 = vrot.lane.b32.xlu0 %v1012_v3, %s2704_s24  ;;  %1064 = vrot.lane.b32.xlu1 %v3025_v18, %s2704_s24 }
 0x1ea   : > { %1060 = vrot.lane.b32.xlu1 %v2700_v1, %s2701_s19 }
 0x1ee   : > { %1076 = vrot.lane.b32.xlu1 %v2917_v2, %s2704_s24 }
 0x1f4   : > { %v3176_v33 = vpop.permute.xlu1 %1048  ;;  %v995_v16 = vpop.permute.xlu0 %994 }
 0x1f8   : > { %v3178_v35 = vpop.permute.xlu1 %979  ;;  %v991_v37 = vpop.permute.xlu0 %990 }
 0x1f9   : > { %v1111_v13 = vsel %vm629_vm2, %v3208_v5, %v991_v37  ;;  %v3238_v37 = vsub.s32 0, %v3218_v21 }
 0x1fb   : > { %v3254_v7 = vrot.slane %v1249_v29, %v3238_v37 }
 0x1fc   : > { %v3180_v38 = vpop.permute.xlu1 %996  ;;  %v1035_v39 = vpop.permute.xlu0 %1034 }
 0x200   : > { %v3182_v40 = vpop.permute.xlu1 %975  ;;  %v1051_v18 = vpop.permute.xlu0 %1050 }
 0x204   : > { %v3184_v4 = vpop.permute.xlu1 %992  ;;  %v1031_v44 = vpop.permute.xlu0 %1030 }
 0x208   : > { %v3186_v1 = vpop.permute.xlu1 %1036  ;;  %v1047_v12 = vpop.permute.xlu0 %1046 }
 0x20c   : > { %v3188_v45 = vpop.permute.xlu1 %1032  ;;  %v3190_v50 = vpop.permute.xlu0 %981 }
 0x210   : > { %v3192_v51 = vpop.permute.xlu1 %947  ;;  %v978_v53 = vpop.permute.xlu0 %977 }
 0x214   : > { %v3194_v54 = vpop.permute.xlu1 %943  ;;  %v1018_v56 = vpop.permute.xlu0 %1017 }
 0x218   : > { %v3196_v57 = vpop.permute.xlu1 %1019  ;;  %v1014_v58 = vpop.permute.xlu0 %1013 }
 0x219   : > { %v1127_v19 = vsel %vm705_vm3, %v1111_v13, %v1014_v58 }
 0x21a   : > { %v1144_v26 = vsel %vm1142_vm10, %v1127_v19, %v1031_v44 }
 0x21b   : > { %v1161_v32 = vsel %vm1159_vm12, %v1144_v26, %v1047_v12 }
 0x21c   : > { %v3198_v59 = vpop.permute.xlu1 %1056  ;;  %v1067_v36 = vpop.permute.xlu0 %1066 }
 0x220   : > { %v3200_v11 = vpop.permute.xlu1 %1052  ;;  %v950_v60 = vpop.permute.xlu0 %949 }
 0x224   : > { %v3203_v62 = vpop.permute.xlu1 %1015  ;;  %v3205_v63 = vpop.permute.xlu0 %1002 }
 0x228   : > { %v3210_v9 = vpop.permute.xlu1 %987  ;;  %v946_v10 = vpop.permute.xlu0 %945 }
 0x229   : > { %v1083_v15 = vsel %vm587_vm0, %v2961_v46, %v946_v10 }
 0x22a   : > { %v1099_v20 = vsel %vm612_vm1, %v1083_v15, %v978_v53  ;;  %v3247_v53 = vrot.slane %v1249_v29, %v3227_v27  ;;  %v1085_v29 = vsel %vm587_vm0, %v2949_v42, %v3192_v51 }
 0x22b   : > { %v1115_v22 = vsel %vm629_vm2, %v1099_v20, %v995_v16 }
 0x22c   : > { %v1131_v23 = vsel %vm705_vm3, %v1115_v22, %v1018_v56  ;;  %v3222_v24 = vpop.permute.xlu1 %1004  ;;  %v999_v25 = vpop.permute.xlu0 %998 }
 0x22d   : > { %v1148_v46 = vsel %vm1142_vm10, %v1131_v23, %v1035_v39 }
 0x22e   : > { %v1165_v28 = vsel %vm1159_vm12, %v1148_v46, %v1051_v18 }
 0x22f   : > { %v1182_v3 = vsel %vm1176_vm11, %v1165_v28, %v1067_v36 }
 0x230   : > { %v3234_v31 = vpop.permute.xlu1 %983  ;;  %v1063_v16 = vpop.permute.xlu0 %1062  ;;  %v2549_v39 = vcombine.low %v1182_v3, %v3003_v41 }
 0x231   : > { %v3242_v44 = vsel %vm1176_vm11, %v1161_v32, %v1063_v16  ;;  %v1101_v16 = vsel %vm612_vm1, %v1085_v29, %v3178_v35 }
 0x232   : > { %v2547_v18 = vcombine.low %v3242_v44, %v2971_v49  ;;  %v1238_v56 = vunpack.c.h.bf16 %v2549_v39  ;;  %v1237_v41 = vunpack.c.l.bf16 %v2549_v39 }
 0x234   : > { %v1233_v58 = vunpack.c.l.bf16 %v2547_v18  ;;  %v1234_v36 = vunpack.c.h.bf16 %v2547_v18  ;;  %v3249_v61 = vpop.permute.xlu1 %1000  ;;  %v3251_v12 = vpop.permute.xlu0 %1042  ;;  %v1266_v49 = vmul.f32 %v3247_v53, %v1238_v56  ;;  %v1265_v23 = vmul.f32 %v3254_v7, %v1237_v41 }
 0x235   : > { %v1117_v56 = vsel %vm629_vm2, %v1101_v16, %v3180_v38 }
 0x236   : > { %v1261_v10 = vmul.f32 %v3254_v7, %v1233_v58  ;;  %v1262_v13 = vmul.f32 %v3247_v53, %v1234_v36  ;;  %v1285_v26 = vsel %vm587_vm0, %v1266_v49, 0.0  ;;  %v1133_v58 = vsel %vm705_vm3, %v1117_v56, %v3196_v57 }
 0x237   : > { %v1286_v32 = vadd.f32 %v1285_v26, %v1265_v23  ;;  %v1087_v36 = vsel %vm587_vm0, %v2984_v52, %v950_v60  ;;  %v1150_v42 = vsel %vm1142_vm10, %v1133_v58, %v3186_v1  ;;  %v1081_v52 = vsel %vm587_vm0, %v2968_v48, %v3194_v54 }
 0x238   : > { %v3259_v15 = vpop.permute.xlu1 %1044  ;;  %v1039_v19 = vpop.permute.xlu0 %1038  ;;  %v1277_v20 = vsel %vm587_vm0, %v1262_v13, 0.0  ;;  %v1103_v51 = vsel %vm612_vm1, %v1087_v36, %v3190_v50  ;;  %v1167_v35 = vsel %vm1159_vm12, %v1150_v42, %v3200_v11  ;;  %v2561_v11 = vcombine.low %v3137_v8, %v3075_v55 }
 0x239   : > { %v1278_v22 = vadd.f32 %v1277_v20, %v1261_v10  ;;  %v1119_v13 = vsel %vm629_vm2, %v1103_v51, %v999_v25  ;;  %v1097_v29 = vsel %vm612_vm1, %v1081_v52, %v3182_v40 }
 0x23b   : > { %1279 = vadd.xlane.f32.xlu0 %v1278_v22 }
 0x23c   : > { %v1041_v46 = vpop.permute.xlu1 %1040  ;;  %v1055_v28 = vpop.permute.xlu0 %1054 }
 0x23f   : > { %1287 = vadd.xlane.f32.xlu0 %v1286_v32 }
 0x240   : > { %v1073_v39 = vpop.permute.xlu1 %1072  ;;  %v986_v18 = vpop.permute.xlu0 %985 }
 0x244   : > { %v956_v41 = vpop.permute.xlu1 %955  ;;  %v1026_v10 = vpop.permute.xlu0 %1025 }
 0x245   : > { %v1093_v51 = vsel %vm587_vm0, %v3048_v34, %v956_v41 }
 0x246   : > { %v1109_v34 = vsel %vm612_vm1, %v1093_v51, %v3210_v9 }
 0x248   : > { %v1069_v38 = vpop.permute.xlu1 %1068  ;;  %v1022_v49 = vpop.permute.xlu0 %1021 }
 0x249   : > { %v1184_v57 = vsel %vm1176_vm11, %v1167_v35, %v1069_v38  ;;  %v1135_v20 = vsel %vm705_vm3, %v1119_v13, %v1022_v49 }
 0x24a   : > { %v2550_v1 = vcombine.low %v1184_v57, %v3023_v17  ;;  %v2558_v60 = vcombine.low %v1182_v3, %v1184_v57  ;;  %v1152_v50 = vsel %vm1142_vm10, %v1135_v20, %v1039_v19  ;;  %v1113_v19 = vsel %vm629_vm2, %v1097_v29, %v3184_v4 }
 0x24b   : > { %v1169_v17 = vsel %vm1159_vm12, %v1152_v50, %v1055_v28  ;;  %v1129_v36 = vsel %vm705_vm3, %v1113_v19, %v3203_v62 }
 0x24c   : > { %v1239_v22 = vunpack.c.l.bf16 %v2550_v1  ;;  %v1240_v25 = vunpack.c.h.bf16 %v2550_v1  ;;  %v952_v23 = vpop.permute.xlu1 %951  ;;  %1565 = vmatmul.mubr.bf16.vlgmr.msra.gmra.mrb[0].mxu1 %v2558_v60  ;;  %v1071_v26 = vpop.permute.xlu0 %1070  ;;  %v1146_v62 = vsel %vm1142_vm10, %v1129_v36, %v3188_v45  ;;  %v1125_v1 = vsel %vm629_vm2, %v1109_v34, %v3222_v24 }
 0x24d   : > { %2575 = vmatprep.mubr.msk.bf16.mxu1 %vm587_vm0, %v2561_v11  ;;  %v1089_v48 = vsel %vm587_vm0, %v3015_v14, %v952_v23  ;;  %v1186_v58 = vsel %vm1176_vm11, %v1169_v17, %v1071_v26  ;;  %v1163_v45 = vsel %vm1159_vm12, %v1146_v62, %v3176_v33 }
 0x24e   : > { %v1267_v54 = vmul.f32 %v3254_v7, %v1239_v22  ;;  %v1268_v3 = vmul.f32 %v3247_v53, %v1240_v25  ;;  %v1105_v40 = vsel %vm612_vm1, %v1089_v48, %v3234_v31  ;;  %v2551_v31 = vcombine.low %v1186_v58, %v3137_v8 }
 0x24f   : > { %v1121_v35 = vsel %vm629_vm2, %v1105_v40, %v3249_v61  ;;  %v2563_v61 = vcombine.low %v3124_v43, %v2917_v2 }
 0x250   : > { %v1028_v32 = vpop.permute.xlu1 %1027  ;;  %v954_v16 = vpop.permute.xlu0 %953  ;;  %v1289_v56 = vsel %vm587_vm0, %v1268_v3, 0.0  ;;  %v1242_v41 = vunpack.c.h.bf16 %v2551_v31  ;;  %v1241_v24 = vunpack.c.l.bf16 %v2551_v31 }
 0x251   : > { %v1091_v14 = vsel %vm587_vm0, %v3117_v0, %v954_v16  ;;  %v1290_v28 = vadd.f32 %v1289_v56, %v1267_v54  ;;  %v1141_v11 = vsel %vm705_vm3, %v1125_v1, %v1028_v32 }
 0x252   : > { %v1107_v42 = vsel %vm612_vm1, %v1091_v14, %v986_v18  ;;  %v1158_v19 = vsel %vm1142_vm10, %v1141_v11, %v3259_v15 }
 0x253   : > { %v1123_v4 = vsel %vm629_vm2, %v1107_v42, %v3205_v63  ;;  %1291 = vadd.xlane.f32.xlu0 %v1290_v28  ;;  %v1269_v42 = vmul.f32 %v3254_v7, %v1241_v24 }
 0x254   : > { %v1024_v13 = vpop.permute.xlu1 %1023  ;;  %v1139_v0 = vsel %vm705_vm3, %v1123_v4, %v1026_v10  ;;  %v1059_v38 = vpop.permute.xlu0 %1058 }
 0x255   : > { %v1137_v18 = vsel %vm705_vm3, %v1121_v35, %v1024_v13  ;;  %v1156_v63 = vsel %vm1142_vm10, %v1139_v0, %v3251_v12 }
 0x256   : > { %v1154_v49 = vsel %vm1142_vm10, %v1137_v18, %v1041_v46  ;;  %v1173_v10 = vsel %vm1159_vm12, %v1156_v63, %v1059_v38 }
 0x257   : > { %v1171_v8 = vsel %vm1159_vm12, %v1154_v49, %v3198_v59  ;;  %v2705_v49 = vmov 0.0  }
 0x258   : > { %v1065_v57 = vpop.permute.xlu1 %1064  ;;  %v1075_v20 = vpop.permute.xlu0 %1074  ;;  %v1188_v12 = vsel %vm1176_vm11, %v1171_v8, %v1073_v39  ;;  %v1597_v34 = vrot.slane %v2705_v49, 1  ;;  %v1673_v8 = vrot.slane %v2705_v49, 2 }
 0x259   : > { %v1180_v46 = vsel %vm1176_vm11, %v1163_v45, %v1065_v57  ;;  %v1190_v9 = vsel %vm1176_vm11, %v1173_v10, %v1075_v20  ;;  %v2552_v52 = vcombine.low %v1188_v12, %v3075_v55  ;;  %v2560_v59 = vcombine.low %v1186_v58, %v1188_v12 }
 0x25a   : > { %v2548_v60 = vcombine.low %v1180_v46, %v2964_v47  ;;  %v2556_v50 = vcombine.low %v3242_v44, %v1180_v46  ;;  %v2553_v33 = vcombine.low %v1190_v9, %v3124_v43  ;;  %v1270_v43 = vmul.f32 %v3247_v53, %v1242_v41  ;;  %v3371_v41 = vld [vmem:[#allocation2] ss:$0 sm:$0xff] }
 0x25b   : > { %1573 = vmatmul.mubr.bf16.gmra.mrb[4].mxu1 %v2560_v59  ;;  %v1243_v39 = vunpack.c.l.bf16 %v2552_v52  ;;  %v1244_v22 = vunpack.c.h.bf16 %v2552_v52 }
 0x25c   : > { %v1235_v25 = vunpack.c.l.bf16 %v2548_v60  ;;  %v1236_v23 = vunpack.c.h.bf16 %v2548_v60  ;;  %v1245_v26 = vunpack.c.l.bf16 %v2553_v33  ;;  %v1246_v29 = vunpack.c.h.bf16 %v2553_v33  ;;  %v3343_v55 = vpop.permute.xlu1 %1060  ;;  %1557 = vmatmul.mubr.bf16.vlgmr.msra.gmra.mrb[8].mxu0 %v2556_v50  ;;  %2576 = vmatprep.mubr.msk.bf16.mxu1 %vm587_vm0, %v2563_v61 }
 0x25d   : > { %v1271_v47 = vmul.f32 %v3254_v7, %v1243_v39  ;;  %v1272_v44 = vmul.f32 %v3247_v53, %v1244_v22  ;;  %v1175_v16 = vsel %vm1159_vm12, %v1158_v19, %v3343_v55  ;;  %v1293_v31 = vsel %vm587_vm0, %v1270_v43, 0.0 }
 0x25e   : > { %v1263_v48 = vmul.f32 %v3254_v7, %v1235_v25  ;;  %v1264_v17 = vmul.f32 %v3247_v53, %v1236_v23  ;;  %v1273_v54 = vmul.f32 %v3254_v7, %v1245_v26  ;;  %v1274_v3 = vmul.f32 %v3247_v53, %v1246_v29 }
 0x25f   : > { %v1297_v32 = vsel %vm587_vm0, %v1272_v44, 0.0  ;;  %v1294_v0 = vadd.f32 %v1293_v31, %v1269_v42  ;;  %v2653_v61 = vpack.i.bf16 %v1673_v8, %v1597_v34 }
 0x260   : > { %v3358_v56 = vpop.permute.xlu1 %1076  ;;  %v1298_v40 = vadd.f32 %v1297_v32, %v1271_v47  ;;  %v1281_v58 = vsel %vm587_vm0, %v1264_v17, 0.0  ;;  %v1301_v14 = vsel %vm587_vm0, %v1274_v3, 0.0 }
 0x261   : > { %v1192_v28 = vsel %vm1176_vm11, %v1175_v16, %v3358_v56  ;;  %v1282_v36 = vadd.f32 %v1281_v58, %v1263_v48  ;;  %v1302_v4 = vadd.f32 %v1301_v14, %v1273_v54 }
 0x262   : > { %v2554_v15 = vcombine.low %v1192_v28, %v2917_v2  ;;  %1299 = vadd.xlane.f32.xlu0 %v1298_v40  ;;  %v2562_v51 = vcombine.low %v1190_v9, %v1192_v28 }
 0x263   : > { %1283 = vadd.xlane.f32.xlu1 %v1282_v36 }
 0x264   : > { %1581 = vmatmul.mubr.bf16.gmra.mrb[8].mxu1 %v2562_v51  ;;  %v1247_v35 = vunpack.c.l.bf16 %v2554_v15  ;;  %v1248_v13 = vunpack.c.h.bf16 %v2554_v15 }
 0x266   : > { %v1275_v38 = vmul.f32 %v3254_v7, %v1247_v35  ;;  %v1276_v62 = vmul.f32 %v3247_v53, %v1248_v13 }
 0x267   : > { %1295 = vadd.xlane.f32.xlu1 %v1294_v0 }
 0x268   : > { %v1305_v18 = vsel %vm587_vm0, %v1276_v62, 0.0 }
 0x269   : > { %v1306_v63 = vadd.f32 %v1305_v18, %v1275_v38 }
 0x26b   : > { %1307 = vadd.xlane.f32.xlu0 %v1306_v63 }
 0x278   : > { %2654 = vperm.xlu1 %2652, %v2653_v61  }
 0x29c   : > { %1303 = vadd.xlane.f32.xlu1 %v1302_v4 }
 0x2c8   : > { %v1280_v53 = vpop.xlane.xlu0 %1279 }
 0x2c9   : > { %v1316_v7 = vadd.f32 %v3371_v41, %v1280_v53 }
 0x2cb   : > { %1325 = vst.msk [vmem:[%s3378_s18] sm:$0xff] %vm1324_vm13, %v1316_v7  ;;  %v1341_v10 = vrot.slane %v1316_v7, 7 }
 0x2cc   : > { %v1288_v45 = vpop.xlane.xlu0 %1287 }
 0x2cd   : > { %v1366_v57 = vsel %vm863_vm4, %v1341_v10, 0.0  ;;  %v1318_v20 = vadd.f32 %v3371_v41, %v1288_v45  ;;  %v1358_v12 = vsel %vm863_vm4, 0.0, %v1341_v10 }
 0x2ce   : > { %v1600_v46 = vrot.slane %v1366_v57, 1  ;;  %1401 = vperm.xlu1 %2652, %v1358_v12   ;;  %v1599_v9 = vrot.slane %v1358_v12, 1  ;;  %v1676_v48 = vrot.slane %v1366_v57, 2  ;;  %v1675_v17 = vrot.slane %v1358_v12, 2 }
 0x2cf   : > { %1327 = vst.msk [vmem:[%s3378_s18 + $0x10] sm:$0xff] %vm1324_vm13, %v1318_v20  ;;  %v1343_v59 = vrot.slane %v1318_v20, 7 }
 0x2d0   : > { %v1601_v52 = vsel %vm1596_vm14, %v1599_v9, %v1600_v46  ;;  %v1677_v36 = vsel %vm1672_vm15, %v1675_v17, %v1676_v48 }
 0x2d1   : > { %v1360_v1 = vsel %vm863_vm4, 0.0, %v1343_v59  ;;  %v1368_v42 = vsel %vm863_vm4, %v1343_v59, 0.0 }
 0x2d2   : > { %1625 = vperm.xlu1 %2652, %v1601_v52   ;;  %v1682_v51 = vrot.slane %v1368_v42, 2  ;;  %v1681_v31 = vrot.slane %v1360_v1, 2  ;;  %v1606_v13 = vrot.slane %v1368_v42, 1  ;;  %v1605_v0 = vrot.slane %v1360_v1, 1 }
 0x2d4   : > { %v1683_v18 = vsel %vm1672_vm15, %v1681_v31, %v1682_v51  ;;  %v1607_v8 = vsel %vm1596_vm14, %v1605_v0, %v1606_v13 }
 0x2d6   : > { %1411 = vperm.xlu1 %2652, %v1360_v1  }
 0x2e0   : > { %v1292_v60 = vpop.xlane.xlu0 %1291 }
 0x2e1   : > { %v1319_v50 = vadd.f32 %v3371_v41, %v1292_v60 }
 0x2e3   : > { %1328 = vst.msk [vmem:[%s3378_s18 + $0x18] sm:$0xff] %vm1324_vm13, %v1319_v50  ;;  %v1344_v33 = vrot.slane %v1319_v50, 7 }
 0x2e5   : > { %v1361_v11 = vsel %vm863_vm4, 0.0, %v1344_v33  ;;  %v1369_v3 = vsel %vm863_vm4, %v1344_v33, 0.0 }
 0x2e6   : > { %1416 = vperm.xlu1 %2652, %v1361_v11   ;;  %v1609_v14 = vrot.slane %v1369_v3, 1  ;;  %v1608_v28 = vrot.slane %v1361_v11, 1  ;;  %v1685_v49 = vrot.slane %v1369_v3, 2  ;;  %v1684_v34 = vrot.slane %v1361_v11, 2 }
 0x2e8   : > { %v1610_v35 = vsel %vm1596_vm14, %v1608_v28, %v1609_v14  ;;  %v1686_v57 = vsel %vm1672_vm15, %v1684_v34, %v1685_v49 }
 0x2ef   : > { %v1300_v39 = vpop.xlane.xlu0 %1299 }
 0x2f0   : > { %v3395_v22 = vadd.f32 %v3371_v41, %v1300_v39  ;;  %v1284_v25 = vpop.xlane.xlu1 %1283 }
 0x2f1   : > { %v1317_v23 = vadd.f32 %v3371_v41, %v1284_v25 }
 0x2f2   : > { %1330 = vst.msk [vmem:[%s3378_s18 + $0x28] sm:$0xff] %vm1324_vm13, %v3395_v22  ;;  %v1346_v10 = vrot.slane %v3395_v22, 7 }
 0x2f3   : > { %1326 = vst.msk [vmem:[%s3378_s18 + $0x8] sm:$0xff] %vm1324_vm13, %v1317_v23  ;;  %v1342_v26 = vrot.slane %v1317_v23, 7 }
 0x2f4   : > { %v1296_v29 = vpop.xlane.xlu1 %1295  ;;  %v1371_v9 = vsel %vm863_vm4, %v1346_v10, 0.0  ;;  %v1363_v52 = vsel %vm863_vm4, 0.0, %v1346_v10 }
 0x2f5   : > { %v1367_v24 = vsel %vm863_vm4, %v1342_v26, 0.0  ;;  %v1320_v47 = vadd.f32 %v3371_v41, %v1296_v29  ;;  %v1359_v43 = vsel %vm863_vm4, 0.0, %v1342_v26  ;;  %v1615_v60 = vrot.slane %v1371_v9, 1 }
 0x2f6   : > { %v1603_v44 = vrot.slane %v1367_v24, 1  ;;  %v1602_v54 = vrot.slane %v1359_v43, 1  ;;  %1406 = vperm.xlu0 %2658, %v1359_v43   ;;  %v1679_v16 = vrot.slane %v1367_v24, 2  ;;  %v1678_v40 = vrot.slane %v1359_v43, 2  ;;  %v3447_v24 = vld [vmem:[%s3974_s6] sm:$0xff] }
 0x2f7   : > { %1329 = vst.msk [vmem:[%s3378_s18 + $0x20] sm:$0xff] %vm1324_vm13, %v1320_v47  ;;  %v1345_v4 = vrot.slane %v1320_v47, 7  ;;  %v1614_v50 = vrot.slane %v1363_v52, 1  ;;  %v3451_v47 = vrot.slane %v3447_v24, %v3238_v37  ;;  %v3457_v17 = vrot.slane %v3447_v24, %v3227_v27 }
 0x2f8   : > { %v1308_v19 = vpop.xlane.xlu0 %1307  ;;  %v1604_v58 = vsel %vm1596_vm14, %v1602_v54, %v1603_v44  ;;  %v1680_v15 = vsel %vm1672_vm15, %v1678_v40, %v1679_v16  ;;  %v3442_v29 = vpop.permute.xlu1 %2654  ;;  %v1730_v44 = vsub.s32 2, %v3218_v21  ;;  %v1691_v0 = vrot.slane %v1371_v9, 2 }
 0x2f9   : > { %v1323_v32 = vadd.f32 %v3371_v41, %v1308_v19  ;;  %1629 = vperm.xlu1 %2652, %v1604_v58   ;;  %v1362_v38 = vsel %vm863_vm4, 0.0, %v1345_v4  ;;  %v1370_v63 = vsel %vm863_vm4, %v1345_v4, 0.0  ;;  %v1616_v39 = vsel %vm1596_vm14, %v1614_v50, %v1615_v60 }
 0x2fa   : > { %1701 = vperm.xlu0 %2658, %v1677_v36   ;;  %v1688_v61 = vrot.slane %v1370_v63, 2  ;;  %v1687_v53 = vrot.slane %v1362_v38, 2  ;;  %v1612_v59 = vrot.slane %v1370_v63, 1  ;;  %v1611_v1 = vrot.slane %v1362_v38, 1 }
 0x2fb   : > { %1332 = vst.msk [vmem:[%s3378_s18 + $0x38] sm:$0xff] %vm1324_vm13, %v1323_v32  ;;  %v1348_v62 = vrot.slane %v1323_v32, 7  ;;  %v2656_v54 = vunpack.i.l.bf16 %v3442_v29  ;;  %v1438_v19 = vmul.f32 0.0, %v3451_v47  ;;  %v3464_v32 = vrot.slane %v3447_v24, %v1730_v44 }
 0x2fc   : > { %v1689_v46 = vsel %vm1672_vm15, %v1687_v53, %v1688_v61  ;;  %v1613_v11 = vsel %vm1596_vm14, %v1611_v1, %v1612_v59  ;;  %v2657_v16 = vunpack.i.h.bf16 %v3442_v29  ;;  %v1690_v49 = vrot.slane %v1363_v52, 2 }
 0x2fd   : > { %1705 = vperm.xlu1 %2652, %v1680_v15   ;;  %v3422_v7 = vsel %vm863_vm4, 0.0, %v1348_v62  ;;  %v3426_v45 = vsel %vm863_vm4, %v1348_v62, 0.0  ;;  %v1656_v51 = vmul.f32 %v2656_v54, %v3457_v17  ;;  %v1755_v1 = vsub.s32 3, %v3218_v21 }
 0x2fe   : > { %1637 = vperm.xlu0 %2658, %v1610_v35   ;;  %v1802_v20 = vrot.slane %v3426_v45, 2  ;;  %v1801_v12 = vrot.slane %v3422_v7, 2  ;;  %v1775_v40 = vrot.slane %v3426_v45, 1  ;;  %v1732_v63 = vmul.f32 %v2657_v16, %v3464_v32 }
 0x2ff   : > { %v1692_v45 = vsel %vm1672_vm15, %v1690_v49, %v1691_v0  ;;  %v1783_v60 = vsub.s32 4, %v3218_v21  ;;  %v3492_v50 = vrot.slane %v3447_v24, %v1755_v1 }
 0x300   : > { %v1803_v33 = vsel %vm1672_vm15, %v1801_v12, %v1802_v20 }
 0x301   : > { %1421 = vperm.xlu1 %2652, %v1362_v38  }
 0x302   : > { %1709 = vperm.xlu0 %2658, %v1683_v18  }
 0x305   : > { %1633 = vperm.xlu1 %2652, %v1607_v8  }
 0x306   : > { %1750 = vperm.xlu0 %2658, %v3422_v7  }
 0x309   : > { %1713 = vperm.xlu1 %2652, %v1686_v57  }
 0x30a   : > { %1717 = vperm.xlu0 %2658, %v1689_v46  }
 0x30d   : > { %1426 = vperm.xlu1 %2652, %v1363_v52  }
 0x30e   : > { %1805 = vperm.xlu0 %2658, %v1803_v33  }
 0x311   : > { %1641 = vperm.xlu1 %2652, %v1613_v11   ;;  %v3495_v11 = vrot.slane %v3447_v24, %v1783_v60 }
 0x312   : > { %1645 = vperm.xlu0 %2658, %v1616_v39   ;;  %v1810_v39 = vsub.s32 5, %v3218_v21 }
 0x31f   : > { %v3438_v22 = vpop.f32.mrb[0].mxu1 }
 0x320   : > { %v1568_v25 = vpop.f32.mrb[1].mxu1 }
 0x321   : > { %v3440_v23 = vpop.f32.mrb[2].mxu1 }
 0x322   : > { %v1571_v26 = vpop.f32.mrb[3].mxu1 }
 0x329   : > { %v1304_v43 = vpop.xlane.xlu1 %1303 }
 0x32a   : > { %v1322_v48 = vadd.f32 %v3371_v41, %v1304_v43  ;;  %v1774_v41 = vrot.slane %v3422_v7, 1 }
 0x32c   : > { %1331 = vst.msk [vmem:[%s3378_s18 + $0x30] sm:$0xff] %vm1324_vm13, %v1322_v48  ;;  %v1347_v3 = vrot.slane %v1322_v48, 7  ;;  %v1776_v61 = vsel %vm1596_vm14, %v1774_v41, %v1775_v40  ;;  %v1830_v48 = vsub.s32 6, %v3218_v21  ;;  %v3506_v40 = vrot.slane %v3447_v24, %v1810_v39  ;;  %v3540_v39 = vld [vmem:[%s3975_s7] ss:$0 sm:$0xff] }
 0x32d   : > { %v1850_v41 = vsub.s32 7, %v3218_v21 }
 0x32e   : > { %v1372_v58 = vsel %vm863_vm4, %v1347_v3, 0.0  ;;  %v3470_v14 = vpop.f32.mrb[4].mxu1  ;;  %v1364_v28 = vsel %vm863_vm4, 0.0, %v1347_v3 }
 0x32f   : > { %v1618_v36 = vrot.slane %v1372_v58, 1  ;;  %v1558_v42 = vpop.f32.mrb[8].mxu0  ;;  %v1576_v4 = vpop.f32.mrb[5].mxu1  ;;  %v1617_v15 = vrot.slane %v1364_v28, 1  ;;  %1431 = vperm.xlu1 %2652, %v1364_v28   ;;  %v1694_v7 = vrot.slane %v1372_v58, 2  ;;  %v1693_v10 = vrot.slane %v1364_v28, 2 }
 0x330   : > { %v1559_v31 = vadd.f32 %v1558_v42, %v1438_v19  ;;  %v1560_v35 = vpop.f32.mrb[9].mxu0  ;;  %v3476_v13 = vpop.f32.mrb[6].mxu1  ;;  %v3511_v4 = vrot.slane %v3447_v24, %v1830_v48 }
 0x331   : > { %v1561_v38 = vpop.f32.mrb[10].mxu0  ;;  %v1579_v62 = vpop.f32.mrb[7].mxu1  ;;  %v1619_v18 = vsel %vm1596_vm14, %v1617_v15, %v1618_v36  ;;  %v1695_v9 = vsel %vm1672_vm15, %v1693_v10, %v1694_v7 }
 0x332   : > { %v1664_v34 = vadd.f32 %v1656_v51, %v1559_v31  ;;  %v1563_v8 = vpop.f32.mrb[11].mxu0  ;;  %1649 = vperm.xlu0 %2658, %v1619_v18   ;;  %v3516_v62 = vrot.slane %v3447_v24, %v1850_v41 }
 0x333   : > { %1778 = vperm.xlu1 %2652, %v1776_v61  }
 0x334   : > { %v1740_v53 = vadd.f32 %v1732_v63, %v1664_v34 }
 0x337   : > { %v3484_v57 = vpop.f32.mrb[8].mxu1  ;;  %1721 = vperm.xlu1 %2652, %v1692_v45  }
 0x338   : > { %v1584_v20 = vpop.f32.mrb[9].mxu1 }
 0x339   : > { %v3486_v12 = vpop.f32.mrb[10].mxu1 }
 0x33a   : > { %v1587_v46 = vpop.f32.mrb[11].mxu1 }
 0x33b   : > { %1725 = vperm.xlu1 %2652, %v1695_v9  }
 0x34d   : > { %v1402_v52 = vpop.permute.xlu1 %1401 }
 0x34e   : > { %v1439_v25 = vmul.f32 %v3451_v47, %v1402_v52  ;;  %v1757_v26 = vmul.f32 %v3492_v50, %v1402_v52 }
 0x350   : > { %v1562_v28 = vadd.f32 %v1561_v38, %v1439_v25  ;;  %v1765_v36 = vadd.f32 %v1757_v26, %v1740_v53 }
 0x351   : > { %v1626_v59 = vpop.permute.xlu1 %1625 }
 0x352   : > { %v1657_v3 = vmul.f32 %v3457_v17, %v1626_v59  ;;  %v1785_v19 = vmul.f32 %v3495_v11, %v1626_v59 }
 0x354   : > { %v1665_v51 = vadd.f32 %v1657_v3, %v1562_v28  ;;  %v1793_v31 = vadd.f32 %v1785_v19, %v1765_v36 }
 0x355   : > { %v1412_v33 = vpop.permute.xlu1 %1411 }
 0x356   : > { %v1441_v20 = vmul.f32 %v3451_v47, %v1412_v33  ;;  %v1833_v26 = vmul.f32 %v3511_v4, %v1412_v33  ;;  %v1759_v3 = vmul.f32 %v3492_v50, %v1412_v33 }
 0x358   : > { %v1570_v41 = vadd.f32 %v3440_v23, %v1441_v20 }
 0x365   : > { %v3500_v44 = vpop.permute.xlu1 %1416 }
 0x375   : > { %v1407_v43 = vpop.permute.xlu0 %1406 }
 0x376   : > { %v1440_v58 = vmul.f32 %v3451_v47, %v1407_v43  ;;  %v1758_v38 = vmul.f32 %v3492_v50, %v1407_v43  ;;  %v1832_v63 = vmul.f32 %v3511_v4, %v1407_v43 }
 0x378   : > { %v1630_v42 = vpop.permute.xlu1 %1629  ;;  %v1567_v21 = vadd.f32 %v3438_v22, %v1440_v58  ;;  %v3530_v22 = vld [vmem:[%s3974_s6 + $0x8] ss:$0 sm:$0xff] }
 0x379   : > { %v1702_v15 = vpop.permute.xlu0 %1701  ;;  %v1658_v18 = vmul.f32 %v3457_v17, %v1630_v42  ;;  %v1786_v7 = vmul.f32 %v3495_v11, %v1630_v42  ;;  %v1852_v24 = vmul.f32 %v3516_v62, %v1630_v42 }
 0x37a   : > { %v1733_v35 = vmul.f32 %v3464_v32, %v1702_v15  ;;  %v1812_v0 = vmul.f32 %v3506_v40, %v1702_v15 }
 0x37b   : > { %v1666_v46 = vadd.f32 %v1658_v18, %v1567_v21 }
 0x37c   : > { %v1741_v49 = vadd.f32 %v1733_v35, %v1665_v51  ;;  %v1820_v34 = vadd.f32 %v1812_v0, %v1793_v31  ;;  %v1706_v8 = vpop.permute.xlu1 %1705 }
 0x37d   : > { %v1734_v61 = vmul.f32 %v3464_v32, %v1706_v8  ;;  %v3523_v53 = vpop.permute.xlu0 %1637  ;;  %v1813_v52 = vmul.f32 %v3506_v40, %v1706_v8  ;;  %v1872_v1 = vmul.f32 %v3530_v22, %v1706_v8  ;;  %v1834_v8 = vmul.f32 %v3511_v4, %v3500_v44 }
 0x37e   : > { %v1766_v10 = vadd.f32 %v1758_v38, %v1741_v49  ;;  %v1840_v45 = vadd.f32 %v1832_v63, %v1820_v34  ;;  %v1760_v63 = vmul.f32 %v3492_v50, %v3500_v44  ;;  %v1854_v20 = vmul.f32 %v3516_v62, %v3523_v53 }
 0x37f   : > { %v1742_v25 = vadd.f32 %v1734_v61, %v1666_v46 }
 0x380   : > { %v1794_v9 = vadd.f32 %v1786_v7, %v1766_v10  ;;  %v1860_v59 = vadd.f32 %v1852_v24, %v1840_v45  ;;  %v3535_v60 = vpop.permute.xlu1 %1421  ;;  %v1788_v45 = vmul.f32 %v3495_v11, %v3523_v53 }
 0x381   : > { %v1710_v19 = vpop.permute.xlu0 %1709  ;;  %v1767_v15 = vadd.f32 %v1759_v3, %v1742_v25 }
 0x382   : > { %v1821_v43 = vadd.f32 %v1813_v52, %v1794_v9  ;;  %v1880_v48 = vadd.f32 %v1872_v1, %v1860_v59  ;;  %v1735_v0 = vmul.f32 %v3464_v32, %v1710_v19  ;;  %v1814_v21 = vmul.f32 %v3506_v40, %v1710_v19 }
 0x383   : > { %v1873_v33 = vmul.f32 %v3530_v22, %v1710_v19 }
 0x384   : > { %v1895_v58 = vadd.f32 %v3540_v39, %v1880_v48  ;;  %v1634_v28 = vpop.permute.xlu1 %1633  ;;  %v1841_v36 = vadd.f32 %v1833_v26, %v1821_v43 }
 0x385   : > { %v1659_v42 = vmul.f32 %v3457_v17, %v1634_v28  ;;  %v1787_v51 = vmul.f32 %v3495_v11, %v1634_v28  ;;  %v1853_v31 = vmul.f32 %v3516_v62, %v1634_v28  ;;  %v3563_v9 = vpop.permute.xlu0 %1750 }
 0x386   : > { %v1903_v35 = vmax.f32 %v1895_v58, 0.0 }
 0x387   : > { %v1667_v18 = vadd.f32 %v1659_v42, %v1570_v41  ;;  %v1795_v23 = vadd.f32 %v1787_v51, %v1767_v15  ;;  %v1861_v38 = vadd.f32 %v1853_v31, %v1841_v36  ;;  %v1835_v42 = vmul.f32 %v3511_v4, %v3535_v60 }
 0x388   : > { %v1911_v49 = vpack.c.bf16 %v1903_v35, %v1903_v35  ;;  %v3554_v34 = vpop.permute.xlu1 %1713 }
 0x389   : > { %v1743_v61 = vadd.f32 %v1735_v0, %v1667_v18  ;;  %v1822_v7 = vadd.f32 %v1814_v21, %v1795_v23  ;;  %v1881_v24 = vadd.f32 %v1873_v33, %v1861_v38  ;;  %v1815_v1 = vmul.f32 %v3506_v40, %v3554_v34  ;;  %v3574_v35 = vpop.permute.xlu0 %1717 }
 0x38a   : > { %v1920_v10 = vshrl.u32 %v1911_v49, 16  ;;  %v1874_v25 = vmul.f32 %v3530_v22, %v3554_v34  ;;  %v1923_v41 = vshll.u32 %v1911_v49, 16 }
 0x38b   : > { %v1896_v46 = vadd.f32 %v3540_v39, %v1881_v24  ;;  %v1768_v52 = vadd.f32 %v1760_v63, %v1743_v61  ;;  %v1842_v59 = vadd.f32 %v1834_v8, %v1822_v7  ;;  %v1875_v63 = vmul.f32 %v3530_v22, %v3574_v35 }
 0x38c   : > { %v3569_v26 = vpop.permute.xlu1 %1426  ;;  %v1922_v19 = vrot.slane %v1920_v10, 7 }
 0x38d   : > { %v1904_v43 = vmax.f32 %v1896_v46, 0.0  ;;  %v1796_v48 = vadd.f32 %v1788_v45, %v1768_v52  ;;  %v1862_v3 = vadd.f32 %v1854_v20, %v1842_v59 }
 0x38e   : > { %v1925_v0 = vor.u32 %v1923_v41, %v1922_v19 }
 0x38f   : > { %v1912_v58 = vpack.c.bf16 %v1904_v43, %v1904_v43  ;;  %v1823_v28 = vadd.f32 %v1815_v1, %v1796_v48  ;;  %v1882_v36 = vadd.f32 %v1874_v25, %v1862_v3  ;;  %v1442_v48 = vmul.f32 %v3451_v47, %v3500_v44 }
 0x390   : > { %v1642_v15 = vpop.permute.xlu1 %1641  ;;  %v1983_v61 = vsel %vm2937_vm8, 0, %v1925_v0  ;;  %v1736_v44 = vmul.f32 %v3464_v32, %v3554_v34 }
 0x391   : > { %v1927_v51 = vshrl.u32 %v1912_v58, 16  ;;  %v1897_v31 = vadd.f32 %v3540_v39, %v1882_v36  ;;  %v1843_v21 = vadd.f32 %v1835_v42, %v1823_v28  ;;  %v1855_v33 = vmul.f32 %v3516_v62, %v1642_v15 }
 0x392   : > { %v1930_v23 = vshll.u32 %v1912_v58, 16  ;;  %v3583_v10 = vsel %vm2941_vm9, %v1983_v61, 0  ;;  %v1660_v28 = vmul.f32 %v3457_v17, %v3523_v53  ;;  %v1661_v34 = vmul.f32 %v3457_v17, %v1642_v15 }
 0x393   : > { %v1929_v18 = vrot.slane %v1927_v51, 7  ;;  %v1905_v38 = vmax.f32 %v1897_v31, 0.0  ;;  %v1863_v49 = vadd.f32 %v1855_v33, %v1843_v21  ;;  %2091 = vrot.lane.b32.xlu1 %v3583_v10, %s2699_s16  ;;  %v2069_v20 = vrot.slane %v3583_v10, 1 }
 0x394   : > { %v2002_v1 = vshll.u32 %v3583_v10, 16  ;;  %v2000_v19 = vshrl.u32 %v3583_v10, 16  ;;  %v1575_v31 = vadd.f32 %v3470_v14, %v1442_v48 }
 0x395   : > { %v1913_v8 = vpack.c.bf16 %v1905_v38, %v1905_v38  ;;  %v1932_v7 = vor.u32 %v1930_v23, %v1929_v18  ;;  %v1883_v24 = vadd.f32 %v1875_v63, %v1863_v49  ;;  %2076 = vrot.lane.b32.xlu0 %v2069_v20, %s2697_s29  ;;  %v1443_v18 = vmul.f32 %v3451_v47, %v3535_v60 }
 0x396   : > { %v2004_v41 = vrot.slane %v2002_v1, 1  ;;  %v1668_v21 = vadd.f32 %v1660_v28, %v1575_v31  ;;  %v1761_v63 = vmul.f32 %v3492_v50, %v3535_v60  ;;  %v1789_v49 = vmul.f32 %v3495_v11, %v1642_v15 }
 0x397   : > { %v1934_v45 = vshrl.u32 %v1913_v8, 16  ;;  %v1898_v46 = vadd.f32 %v3540_v39, %v1883_v24  ;;  %v1984_v52 = vsel %vm2937_vm8, 0, %v1932_v7  ;;  %v1937_v3 = vshll.u32 %v1913_v8, 16  ;;  %2131 = vrot.lane.b32.xlu1 %v2069_v20, %s2702_s20  ;;  %v3630_v7 = vpop.permute.xlu0 %1805 }
 0x398   : > { %v3595_v43 = vsel %vm2941_vm9, %v1984_v52, 0  ;;  %v2005_v36 = vor.u32 %v2004_v41, %v2000_v19  ;;  %v1744_v14 = vadd.f32 %v1736_v44, %v1668_v21  ;;  %v1578_v61 = vadd.f32 %v3476_v13, %v1443_v18 }
 0x399   : > { %v1936_v59 = vrot.slane %v1934_v45, 7  ;;  %v1906_v25 = vmax.f32 %v1898_v46, 0.0  ;;  %2093 = vrot.lane.b32.xlu0 %v3595_v43, %s2699_s16  ;;  %v3610_v0 = vrot.slane %v3595_v43, 1  ;;  %v1737_v13 = vmul.f32 %v3464_v32, %v3574_v35 }
 0x39a   : > { %v1769_v24 = vadd.f32 %v1761_v63, %v1744_v14  ;;  %v1669_v20 = vadd.f32 %v1661_v34, %v1578_v61  ;;  %v1816_v15 = vmul.f32 %v3506_v40, %v3574_v35  ;;  %v1762_v35 = vmul.f32 %v3492_v50, %v3569_v26 }
 0x39b   : > { %v1914_v58 = vpack.c.bf16 %v1906_v25, %v1906_v25  ;;  %v1939_v42 = vor.u32 %v1937_v3, %v1936_v59  ;;  %2048 = vrot.lane.b32.xlu1 %v2005_v36, %s2698_s15  ;;  %v1646_v48 = vpop.permute.xlu0 %1645  ;;  %v1444_v3 = vmul.f32 %v3451_v47, %v3569_v26  ;;  %v1836_v19 = vmul.f32 %v3511_v4, %v3569_v26 }
 0x39c   : > { %v1797_v46 = vadd.f32 %v1789_v49, %v1769_v24  ;;  %v1745_v52 = vadd.f32 %v1737_v13, %v1669_v20  ;;  %v1790_v44 = vmul.f32 %v3495_v11, %v1646_v48  ;;  %v1856_v21 = vmul.f32 %v3516_v62, %v1646_v48 }
 0x39d   : > { %v1941_v51 = vshrl.u32 %v1914_v58, 16  ;;  %2133 = vrot.lane.b32.xlu0 %v3610_v0, %s2702_s20  ;;  %v1985_v53 = vsel %vm2937_vm8, 0, %v1939_v42  ;;  %v1944_v23 = vshll.u32 %v1914_v58, 16  ;;  %v1662_v58 = vmul.f32 %v3457_v17, %v1646_v48 }
 0x39e   : > { %v3622_v38 = vsel %vm2941_vm9, %v1985_v53, 0  ;;  %v1824_v25 = vadd.f32 %v1816_v15, %v1797_v46  ;;  %v1770_v41 = vadd.f32 %v1762_v35, %v1745_v52  ;;  %v1583_v31 = vadd.f32 %v3484_v57, %v1444_v3 }
 0x39f   : > { %v1943_v33 = vrot.slane %v1941_v51, 7  ;;  %2114 = vrot.lane.b32.xlu1 %v2005_v36, %s2703_s4  ;;  %v3635_v45 = vrot.slane %v3622_v38, 1 }
 0x3a0   : > { %v1844_v42 = vadd.f32 %v1836_v19, %v1824_v25  ;;  %v1798_v26 = vadd.f32 %v1790_v44, %v1770_v41  ;;  %v1764_v25 = vmul.f32 %v3492_v50, %v3563_v9  ;;  %v1819_v44 = vmul.f32 %v3506_v40, %v3630_v7 }
 0x3a1   : > { %2149 = vrot.lane.b32.xlu0 %v3622_v38, %s2701_s19  ;;  %v1946_v8 = vor.u32 %v1944_v23, %v1943_v33  ;;  %v1670_v33 = vadd.f32 %v1662_v58, %v1583_v31  ;;  %v1838_v58 = vmul.f32 %v3511_v4, %v3563_v9 }
 0x3a2   : > { %v1864_v23 = vadd.f32 %v1856_v21, %v1844_v42 }
 0x3a3   : > { %2147 = vrot.lane.b32.xlu1 %v3595_v43, %s2701_s19  ;;  %v1986_v60 = vsel %vm2937_vm8, 0, %v1946_v8 }
 0x3a4   : > { %v3649_v59 = vsel %vm2941_vm9, %v1986_v60, 0 }
 0x3a5   : > { %2080 = vrot.lane.b32.xlu0 %v3635_v45, %s2697_s29 }
 0x3a7   : > { %2078 = vrot.lane.b32.xlu1 %v3610_v0, %s2697_s29 }
 0x3a9   : > { %2097 = vrot.lane.b32.xlu0 %v3649_v59, %s2699_s16 }
 0x3ab   : > { %2095 = vrot.lane.b32.xlu1 %v3622_v38, %s2699_s16 }
 0x3ae   : > { %v1432_v1 = vpop.permute.xlu1 %1431 }
 0x3af   : > { %v1445_v28 = vmul.f32 %v3451_v47, %v1432_v1  ;;  %v1763_v57 = vmul.f32 %v3492_v50, %v1432_v1  ;;  %v1837_v49 = vmul.f32 %v3511_v4, %v1432_v1  ;;  %v1839_v50 = vmul.f32 0.0, %v3511_v4 }
 0x3b1   : > { %v1650_v51 = vpop.permute.xlu0 %1649  ;;  %v1586_v53 = vadd.f32 %v3486_v12, %v1445_v28 }
 0x3b2   : > { %v3663_v36 = vpop.permute.xlu1 %1778  ;;  %v1663_v18 = vmul.f32 %v3457_v17, %v1650_v51  ;;  %v1791_v12 = vmul.f32 %v3495_v11, %v1650_v51  ;;  %v1857_v17 = vmul.f32 %v3516_v62, %v1650_v51 }
 0x3b3   : > { %v1792_v28 = vmul.f32 %v3495_v11, %v3663_v36  ;;  %v1859_v11 = vmul.f32 %v2656_v54, %v3516_v62  ;;  %v2007_v54 = vshrl.u32 %v3595_v43, 16 }
 0x3b4   : > { %v1671_v20 = vadd.f32 %v1663_v18, %v1586_v53 }
 0x3b6   : > { %v1722_v14 = vpop.permute.xlu1 %1721 }
 0x3b7   : > { %v1738_v47 = vmul.f32 %v3464_v32, %v1722_v14  ;;  %v1817_v34 = vmul.f32 %v3506_v40, %v1722_v14  ;;  %v1876_v63 = vmul.f32 %v3530_v22, %v1722_v14 }
 0x3b9   : > { %v1746_v8 = vadd.f32 %v1738_v47, %v1670_v33  ;;  %v1825_v61 = vadd.f32 %v1817_v34, %v1798_v26  ;;  %v1884_v24 = vadd.f32 %v1876_v63, %v1864_v23  ;;  %v2009_v23 = vshll.u32 %v3595_v43, 16 }
 0x3ba   : > { %v1726_v46 = vpop.permute.xlu1 %1725 }
 0x3bb   : > { %v1771_v60 = vadd.f32 %v1763_v57, %v1746_v8  ;;  %v1845_v13 = vadd.f32 %v1837_v49, %v1825_v61  ;;  %v1899_v15 = vadd.f32 %v3540_v39, %v1884_v24  ;;  %v1739_v52 = vmul.f32 %v3464_v32, %v1726_v46 }
 0x3bc   : > { %v1818_v1 = vmul.f32 %v3506_v40, %v1726_v46  ;;  %v1877_v48 = vmul.f32 %v3530_v22, %v1726_v46  ;;  %v2011_v57 = vrot.slane %v2009_v23, 1  ;;  %v1879_v49 = vmul.f32 %v2657_v16, %v3530_v22 }
 0x3bd   : > { %v1907_v3 = vmax.f32 %v1899_v15, 0.0  ;;  %v1747_v35 = vadd.f32 %v1739_v52, %v1671_v20  ;;  %v1799_v19 = vadd.f32 %v1791_v12, %v1771_v60  ;;  %v1865_v41 = vadd.f32 %v1857_v17, %v1845_v13 }
 0x3be   : > { %v1858_v20 = vmul.f32 %v3516_v62, %v3663_v36  ;;  %v2012_v12 = vor.u32 %v2011_v57, %v2007_v54  ;;  %v1878_v17 = vmul.f32 %v3530_v22, %v3630_v7  ;;  %v3720_v62 = vrot.slane %v3649_v59, 1 }
 0x3bf   : > { %v1915_v42 = vpack.c.bf16 %v1907_v3, %v1907_v3  ;;  %v1772_v51 = vadd.f32 %v1764_v25, %v1747_v35  ;;  %v1826_v32 = vadd.f32 %v1818_v1, %v1799_v19  ;;  %v1885_v31 = vadd.f32 %v1877_v48, %v1865_v41 }
 0x3c0   : > { %v2016_v7 = vshll.u32 %v3622_v38, 16  ;;  %v2014_v35 = vshrl.u32 %v3622_v38, 16  ;;  %v2023_v41 = vshll.u32 %v3649_v59, 16 }
 0x3c1   : > { %v1948_v21 = vshrl.u32 %v1915_v42, 16  ;;  %v1800_v33 = vadd.f32 %v1792_v28, %v1772_v51  ;;  %v1846_v26 = vadd.f32 %v1838_v58, %v1826_v32  ;;  %v1900_v53 = vadd.f32 %v3540_v39, %v1885_v31 }
 0x3c2   : > { %v1951_v14 = vshll.u32 %v1915_v42, 16  ;;  %v2018_v1 = vrot.slane %v2016_v7, 1  ;;  %v2025_v51 = vrot.slane %v2023_v41, 1  ;;  %v2021_v32 = vshrl.u32 %v3649_v59, 16 }
 0x3c3   : > { %v1950_v18 = vrot.slane %v1948_v21, 7  ;;  %v1827_v9 = vadd.f32 %v1819_v44, %v1800_v33  ;;  %v1908_v34 = vmax.f32 %v1900_v53, 0.0  ;;  %v1866_v29 = vadd.f32 %v1858_v20, %v1846_v26 }
 0x3c4   : > { %v2019_v19 = vor.u32 %v2018_v1, %v2014_v35  ;;  %v2026_v44 = vor.u32 %v2025_v51, %v2021_v32 }
 0x3c5   : > { %v1847_v47 = vadd.f32 %v1839_v50, %v1827_v9  ;;  %v1953_v4 = vor.u32 %v1951_v14, %v1950_v18  ;;  %v1916_v61 = vpack.c.bf16 %v1908_v34, %v1908_v34  ;;  %v1886_v46 = vadd.f32 %v1878_v17, %v1866_v29 }
 0x3c7   : > { %v1867_v63 = vadd.f32 %v1859_v11, %v1847_v47  ;;  %v1987_v40 = vsel %vm2937_vm8, 0, %v1953_v4  ;;  %v1955_v16 = vshrl.u32 %v1916_v61, 16  ;;  %v1958_v13 = vshll.u32 %v1916_v61, 16 }
 0x3c8   : > { %v3702_v8 = vsel %vm2941_vm9, %v1987_v40, 0  ;;  %v1901_v36 = vadd.f32 %v3540_v39, %v1886_v46 }
 0x3c9   : > { %2153 = vrot.lane.b32.xlu0 %v3702_v8, %s2701_s19  ;;  %2099 = vrot.lane.b32.xlu1 %v3702_v8, %s2699_s16  ;;  %v1887_v24 = vadd.f32 %v1879_v49, %v1867_v63  ;;  %v1957_v60 = vrot.slane %v1955_v16, 7  ;;  %v3727_v22 = vrot.slane %v3702_v8, 1  ;;  %v2030_v21 = vshll.u32 %v3702_v8, 16 }
 0x3ca   : > { %v1909_v52 = vmax.f32 %v1901_v36, 0.0  ;;  %v2028_v18 = vshrl.u32 %v3702_v8, 16 }
 0x3cb   : > { %v1960_v15 = vor.u32 %v1958_v13, %v1957_v60  ;;  %v1902_v28 = vadd.f32 %v3540_v39, %v1887_v24  ;;  %v2032_v53 = vrot.slane %v2030_v21, 1 }
 0x3cc   : > { %v1917_v3 = vpack.c.bf16 %v1909_v52, %v1909_v52 }
 0x3cd   : > { %2050 = vrot.lane.b32.xlu0 %v2012_v12, %s2698_s15  ;;  %2135 = vrot.lane.b32.xlu1 %v3635_v45, %s2702_s20  ;;  %v1988_v25 = vsel %vm2937_vm8, 0, %v1960_v15  ;;  %v1910_v50 = vmax.f32 %v1902_v28, 0.0  ;;  %v2033_v23 = vor.u32 %v2032_v53, %v2028_v18  ;;  %v2336_v53 = vld [vmem:[%s3976_s8] sm:$0x3] }
 0x3ce   : > { %v3738_v48 = vsel %vm2941_vm9, %v1988_v25, 0  ;;  %v1962_v58 = vshrl.u32 %v1917_v3, 16  ;;  %v1965_v33 = vshll.u32 %v1917_v3, 16 }
 0x3cf   : > { %v3751_v42 = vrot.slane %v3738_v48, 1  ;;  %v1918_v26 = vpack.c.bf16 %v1910_v50, %v1910_v50  ;;  %v2037_v40 = vshll.u32 %v3738_v48, 16  ;;  %v2035_v54 = vshrl.u32 %v3738_v48, 16 }
 0x3d0   : > { %v1964_v31 = vrot.slane %v1962_v58, 7 }
 0x3d1   : > { %2116 = vrot.lane.b32.xlu0 %v2012_v12, %s2703_s4  ;;  %2151 = vrot.lane.b32.xlu1 %v3649_v59, %s2701_s19  ;;  %v1969_v9 = vshrl.u32 %v1918_v26, 16  ;;  %v1972_v34 = vshll.u32 %v1918_v26, 16  ;;  %v2039_v49 = vrot.slane %v2037_v40, 1 }
 0x3d2   : > { %v1967_v39 = vor.u32 %v1965_v33, %v1964_v31 }
 0x3d3   : > { %v1971_v47 = vrot.slane %v1969_v9, 7  ;;  %v2040_v24 = vor.u32 %v2039_v49, %v2035_v54 }
 0x3d4   : > { %v1989_v14 = vsel %vm2937_vm8, 0, %v1967_v39 }
 0x3d5   : > { %2161 = vrot.lane.b32.xlu0 %v2012_v12, %s2704_s24  ;;  %2082 = vrot.lane.b32.xlu1 %v3720_v62, %s2697_s29  ;;  %v3768_v11 = vsel %vm2941_vm9, %v1989_v14, 0  ;;  %v1974_v4 = vor.u32 %v1972_v34, %v1971_v47  ;;  %v3833_v47 = vrot.slane %v2336_v53, %v3227_v27  ;;  %v3837_v34 = vrot.slane %v2336_v53, %v3238_v37 }
 0x3d6   : > { %v3777_v63 = vrot.slane %v3768_v11, 1  ;;  %v2044_v20 = vshll.u32 %v3768_v11, 16  ;;  %v2042_v6 = vshrl.u32 %v3768_v11, 16 }
 0x3d7   : > { %v1990_v57 = vsel %vm2937_vm8, 0, %v1974_v4 }
 0x3d8   : > { %v3787_v61 = vsel %vm2941_vm9, %v1990_v57, 0  ;;  %v2046_v30 = vrot.slane %v2044_v20, 1 }
 0x3d9   : > { %2139 = vrot.lane.b32.xlu1 %v3727_v22, %s2702_s20  ;;  %2084 = vrot.lane.b32.xlu0 %v3727_v22, %s2697_s29  ;;  %v2110_v29 = vshll.u32 %v3787_v61, 16  ;;  %v2130_v16 = vrot.slane %v3787_v61, 1  ;;  %v2108_v46 = vshrl.u32 %v3787_v61, 16 }
 0x3da   : > { %v2047_v12 = vor.u32 %v2046_v30, %v2042_v6 }
 0x3db   : > { %v2112_v17 = vrot.slane %v2110_v29, 1 }
 0x3dd   : > { %2137 = vrot.lane.b32.xlu0 %v3720_v62, %s2702_s20  ;;  %2155 = vrot.lane.b32.xlu1 %v3738_v48, %s2701_s19  ;;  %v2113_v60 = vor.u32 %v2112_v17, %v2108_v46 }
 0x3e1   : > { %2052 = vrot.lane.b32.xlu1 %v2019_v19, %s2698_s15  ;;  %2101 = vrot.lane.b32.xlu0 %v3738_v48, %s2699_s16 }
 0x3e5   : > { %2118 = vrot.lane.b32.xlu1 %v2019_v19, %s2703_s4  ;;  %2141 = vrot.lane.b32.xlu0 %v3751_v42, %s2702_s20 }
 0x3e9   : > { %2163 = vrot.lane.b32.xlu1 %v2019_v19, %s2704_s24  ;;  %2054 = vrot.lane.b32.xlu0 %v2026_v44, %s2698_s15 }
 0x3ed   : > { %2120 = vrot.lane.b32.xlu0 %v2026_v44, %s2703_s4  ;;  %2086 = vrot.lane.b32.xlu1 %v3751_v42, %s2697_s29 }
 0x3f1   : > { %2056 = vrot.lane.b32.xlu1 %v2033_v23, %s2698_s15  ;;  %2157 = vrot.lane.b32.xlu0 %v3768_v11, %s2701_s19 }
 0x3f5   : > { %2165 = vrot.lane.b32.xlu0 %v2026_v44, %s2704_s24  ;;  %2103 = vrot.lane.b32.xlu1 %v3768_v11, %s2699_s16 }
 0x3f9   : > { %2122 = vrot.lane.b32.xlu1 %v2033_v23, %s2703_s4  ;;  %2088 = vrot.lane.b32.xlu0 %v3777_v63, %s2697_s29 }
 0x3fd   : > { %2167 = vrot.lane.b32.xlu1 %v2033_v23, %s2704_s24  ;;  %2105 = vrot.lane.b32.xlu0 %v3787_v61, %s2699_s16 }
 0x401   : > { %2143 = vrot.lane.b32.xlu1 %v3777_v63, %s2702_s20  ;;  %2058 = vrot.lane.b32.xlu0 %v2040_v24, %s2698_s15 }
 0x405   : > { %2159 = vrot.lane.b32.xlu1 %v3787_v61, %s2701_s19  ;;  %2124 = vrot.lane.b32.xlu0 %v2040_v24, %s2703_s4  ;;  %v2092_v13 = vpop.permute.xlu1 %2091 }
 0x406   : > { %v2204_v44 = vsel %vm629_vm2, %v3208_v5, %v2092_v13 }
 0x407   : > { %v2077_v36 = vpop.permute.xlu0 %2076 }
 0x409   : > { %2060 = vrot.lane.b32.xlu1 %v2047_v12, %s2698_s15  ;;  %2169 = vrot.lane.b32.xlu0 %v2040_v24, %s2704_s24  ;;  %v2132_v15 = vpop.permute.xlu1 %2131 }
 0x40b   : > { %v2094_v7 = vpop.permute.xlu0 %2093 }
 0x40d   : > { %2126 = vrot.lane.b32.xlu1 %v2047_v12, %s2703_s4  ;;  %2145 = vrot.lane.b32.xlu0 %v2130_v16, %s2702_s20  ;;  %v2049_v52 = vpop.permute.xlu1 %2048  ;;  %s403_s20 = scalar_lea.vmem %s3978_s11, %s2590_s13 }
 0x40e   : > { %v2176_v20 = vsel %vm587_vm0, %v3583_v10, %v2049_v52 }
 0x40f   : > { %v2134_v25 = vpop.permute.xlu0 %2133  ;;  %v2190_v6 = vsel %vm612_vm1, %v2176_v20, %v2077_v36 }
 0x410   : > { %v2206_v17 = vsel %vm629_vm2, %v2190_v6, %v2094_v7 }
 0x411   : > { %2171 = vrot.lane.b32.xlu1 %v2047_v12, %s2704_s24  ;;  %2128 = vrot.lane.b32.xlu0 %v2113_v60, %s2703_s4  ;;  %v2115_v1 = vpop.permute.xlu1 %2114 }
 0x412   : > { %v2220_v21 = vsel %vm705_vm3, %v2204_v44, %v2115_v1 }
 0x413   : > { %v2150_v3 = vpop.permute.xlu0 %2149  ;;  %v2236_v26 = vsel %vm1142_vm10, %v2220_v21, %v2132_v15 }
 0x415   : > { %2173 = vrot.lane.b32.xlu0 %v2113_v60, %s2704_s24  ;;  %v2148_v35 = vpop.permute.xlu1 %2147 }
 0x416   : > { %v2252_v18 = vsel %vm1159_vm12, %v2236_v26, %v2148_v35 }
 0x417   : > { %v3813_v19 = vpop.permute.xlu0 %2080 }
 0x419   : > { %v2079_v41 = vpop.permute.xlu1 %2078 }
 0x41b   : > { %v3815_v58 = vpop.permute.xlu0 %2097 }
 0x41d   : > { %v2096_v28 = vpop.permute.xlu1 %2095 }
 0x43b   : > { %v3817_v51 = vpop.permute.xlu1 %2099  ;;  %v3819_v32 = vpop.permute.xlu0 %2153 }
 0x43f   : > { %v2136_v31 = vpop.permute.xlu1 %2135  ;;  %v2051_v50 = vpop.permute.xlu0 %2050 }
 0x440   : > { %v2178_v15 = vsel %vm587_vm0, %v3595_v43, %v2051_v50 }
 0x441   : > { %v2192_v44 = vsel %vm612_vm1, %v2178_v15, %v2079_v41 }
 0x443   : > { %v2152_v33 = vpop.permute.xlu1 %2151  ;;  %v2117_v39 = vpop.permute.xlu0 %2116 }
 0x444   : > { %v2222_v46 = vsel %vm705_vm3, %v2206_v17, %v2117_v39 }
 0x445   : > { %v2238_v10 = vsel %vm1142_vm10, %v2222_v46, %v2134_v25 }
 0x446   : > { %v2254_v1 = vsel %vm1159_vm12, %v2238_v10, %v2150_v3 }
 0x447   : > { %v3829_v14 = vpop.permute.xlu1 %2082  ;;  %v2162_v9 = vpop.permute.xlu0 %2161 }
 0x448   : > { %v2267_v23 = vsel %vm1176_vm11, %v2252_v18, %v2162_v9  ;;  %v2208_v18 = vsel %vm629_vm2, %v2192_v44, %v2096_v28 }
 0x449   : > { %v2579_v5 = vcombine.low %v2267_v23, %v3610_v0 }
 0x44b   : > { %v2320_v4 = vunpack.c.l.bf16 %v2579_v5  ;;  %v2321_v40 = vunpack.c.h.bf16 %v2579_v5  ;;  %v3839_v57 = vpop.permute.xlu1 %2139  ;;  %v3841_v49 = vpop.permute.xlu0 %2084 }
 0x44d   : > { %v2349_v54 = vmul.f32 %v3833_v47, %v2321_v40  ;;  %v2348_v24 = vmul.f32 %v3837_v34, %v2320_v4 }
 0x44f   : > { %v3847_v27 = vpop.permute.xlu1 %2155  ;;  %v2138_v30 = vpop.permute.xlu0 %2137  ;;  %v2364_v0 = vsel %vm587_vm0, %v2349_v54, 0.0 }
 0x450   : > { %v2365_v37 = vadd.f32 %v2364_v0, %v2348_v24 }
 0x452   : > { %2366 = vadd.xlane.f32.xlu1 %v2365_v37 }
 0x453   : > { %v2053_v12 = vpop.permute.xlu1 %2052  ;;  %v3851_v29 = vpop.permute.xlu0 %2101 }
 0x454   : > { %v2180_v3 = vsel %vm587_vm0, %v3622_v38, %v2053_v12 }
 0x455   : > { %v2194_v28 = vsel %vm612_vm1, %v2180_v3, %v3813_v19 }
 0x456   : > { %v2210_v24 = vsel %vm629_vm2, %v2194_v28, %v3815_v58 }
 0x457   : > { %v2119_v60 = vpop.permute.xlu1 %2118  ;;  %v3855_v13 = vpop.permute.xlu0 %2141 }
 0x458   : > { %v2224_v25 = vsel %vm705_vm3, %v2208_v18, %v2119_v60 }
 0x459   : > { %v2240_v41 = vsel %vm1142_vm10, %v2224_v25, %v2136_v31 }
 0x45a   : > { %v2256_v40 = vsel %vm1159_vm12, %v2240_v41, %v2152_v33 }
 0x45b   : > { %v2164_v52 = vpop.permute.xlu1 %2163  ;;  %v2055_v36 = vpop.permute.xlu0 %2054 }
 0x45c   : > { %v2269_v35 = vsel %vm1176_vm11, %v2254_v1, %v2164_v52  ;;  %v2182_v46 = vsel %vm587_vm0, %v3649_v59, %v2055_v36 }
 0x45d   : > { %v2580_v7 = vcombine.low %v2269_v35, %v3635_v45 }
 0x45f   : > { %v2322_v21 = vunpack.c.l.bf16 %v2580_v7  ;;  %v2323_v39 = vunpack.c.h.bf16 %v2580_v7  ;;  %v2087_v26 = vpop.permute.xlu1 %2086  ;;  %v2121_v53 = vpop.permute.xlu0 %2120 }
 0x460   : > { %v2226_v20 = vsel %vm705_vm3, %v2210_v24, %v2121_v53 }
 0x461   : > { %v2351_v43 = vmul.f32 %v3833_v47, %v2323_v39  ;;  %v2350_v50 = vmul.f32 %v3837_v34, %v2322_v21  ;;  %v2242_v19 = vsel %vm1142_vm10, %v2226_v20, %v2138_v30  ;;  %v2196_v30 = vsel %vm612_vm1, %v2182_v46, %v3829_v14 }
 0x462   : > { %v2258_v60 = vsel %vm1159_vm12, %v2242_v19, %v3819_v32  ;;  %v2212_v36 = vsel %vm629_vm2, %v2196_v30, %v3817_v51 }
 0x463   : > { %v2057_v9 = vpop.permute.xlu1 %2056  ;;  %v3870_v23 = vpop.permute.xlu0 %2157  ;;  %v2368_v45 = vsel %vm587_vm0, %v2351_v43, 0.0 }
 0x464   : > { %v2369_v5 = vadd.f32 %v2368_v45, %v2350_v50  ;;  %v2184_v53 = vsel %vm587_vm0, %v3702_v8, %v2057_v9 }
 0x465   : > { %v2198_v51 = vsel %vm612_vm1, %v2184_v53, %v3841_v49 }
 0x466   : > { %2370 = vadd.xlane.f32.xlu0 %v2369_v5  ;;  %v2214_v9 = vsel %vm629_vm2, %v2198_v51, %v3851_v29 }
 0x467   : > { %v2104_v4 = vpop.permute.xlu1 %2103  ;;  %v2166_v54 = vpop.permute.xlu0 %2165 }
 0x468   : > { %v2271_v38 = vsel %vm1176_vm11, %v2256_v40, %v2166_v54 }
 0x469   : > { %v2581_v0 = vcombine.low %v2271_v38, %v3720_v62 }
 0x46b   : > { %v2324_v37 = vunpack.c.l.bf16 %v2581_v0  ;;  %v2325_v31 = vunpack.c.h.bf16 %v2581_v0  ;;  %v2123_v6 = vpop.permute.xlu1 %2122  ;;  %v2089_v12 = vpop.permute.xlu0 %2088 }
 0x46c   : > { %v2228_v32 = vsel %vm705_vm3, %v2212_v36, %v2123_v6 }
 0x46d   : > { %v2353_v17 = vmul.f32 %v3833_v47, %v2325_v31  ;;  %v2352_v33 = vmul.f32 %v3837_v34, %v2324_v37  ;;  %v2244_v25 = vsel %vm1142_vm10, %v2228_v32, %v3839_v57 }
 0x46e   : > { %v2260_v45 = vsel %vm1159_vm12, %v2244_v25, %v3847_v27 }
 0x46f   : > { %v2168_v58 = vpop.permute.xlu1 %2167  ;;  %v2106_v10 = vpop.permute.xlu0 %2105  ;;  %v2372_v62 = vsel %vm587_vm0, %v2353_v17, 0.0 }
 0x470   : > { %v2273_v15 = vsel %vm1176_vm11, %v2258_v60, %v2168_v58  ;;  %v2373_v52 = vadd.f32 %v2372_v62, %v2352_v33 }
 0x471   : > { %v2582_v1 = vcombine.low %v2273_v15, %v3727_v22 }
 0x472   : > { %2374 = vadd.xlane.f32.xlu0 %v2373_v52 }
 0x473   : > { %v2326_v35 = vunpack.c.l.bf16 %v2582_v1  ;;  %v2327_v44 = vunpack.c.h.bf16 %v2582_v1  ;;  %v2144_v7 = vpop.permute.xlu1 %2143  ;;  %v2059_v59 = vpop.permute.xlu0 %2058 }
 0x474   : > { %v2186_v50 = vsel %vm587_vm0, %v3738_v48, %v2059_v59 }
 0x475   : > { %v2355_v21 = vmul.f32 %v3833_v47, %v2327_v44  ;;  %v2354_v39 = vmul.f32 %v3837_v34, %v2326_v35  ;;  %v2200_v57 = vsel %vm612_vm1, %v2186_v50, %v2087_v26 }
 0x476   : > { %v2216_v38 = vsel %vm629_vm2, %v2200_v57, %v2104_v4 }
 0x477   : > { %v2160_v14 = vpop.permute.xlu1 %2159  ;;  %v2125_v18 = vpop.permute.xlu0 %2124  ;;  %v2376_v22 = vsel %vm587_vm0, %v2355_v21, 0.0 }
 0x478   : > { %v2377_v43 = vadd.f32 %v2376_v22, %v2354_v39  ;;  %v2230_v5 = vsel %vm705_vm3, %v2214_v9, %v2125_v18 }
 0x479   : > { %v2246_v27 = vsel %vm1142_vm10, %v2230_v5, %v3855_v13 }
 0x47a   : > { %2378 = vadd.xlane.f32.xlu1 %v2377_v43 }
 0x47b   : > { %v2061_v3 = vpop.permute.xlu1 %2060  ;;  %v2170_v8 = vpop.permute.xlu0 %2169 }
 0x47c   : > { %v2275_v41 = vsel %vm1176_vm11, %v2260_v45, %v2170_v8  ;;  %v2188_v49 = vsel %vm587_vm0, %v3768_v11, %v2061_v3 }
 0x47d   : > { %v2583_v48 = vcombine.low %v2275_v41, %v3751_v42  ;;  %v2202_v29 = vsel %vm612_vm1, %v2188_v49, %v2089_v12  ;;  %v2262_v42 = vsel %vm1159_vm12, %v2246_v27, %v3870_v23 }
 0x47e   : > { %v2218_v37 = vsel %vm629_vm2, %v2202_v29, %v2106_v10 }
 0x47f   : > { %v2328_v28 = vunpack.c.l.bf16 %v2583_v48  ;;  %v2329_v40 = vunpack.c.h.bf16 %v2583_v48  ;;  %v2127_v54 = vpop.permute.xlu1 %2126  ;;  %v2146_v24 = vpop.permute.xlu0 %2145 }
 0x480   : > { %v2232_v20 = vsel %vm705_vm3, %v2216_v38, %v2127_v54 }
 0x481   : > { %v2357_v26 = vmul.f32 %v3833_v47, %v2329_v40  ;;  %v2356_v0 = vmul.f32 %v3837_v34, %v2328_v28  ;;  %v2248_v13 = vsel %vm1142_vm10, %v2232_v20, %v2144_v7 }
 0x482   : > { %v2264_v10 = vsel %vm1159_vm12, %v2248_v13, %v2160_v14  ;;  %v2587_v14 = vld [vmem:[#allocation3] ss:$0 sm:$0xff] }
 0x483   : > { %v2172_v11 = vpop.permute.xlu1 %2171  ;;  %v2129_v31 = vpop.permute.xlu0 %2128  ;;  %v2380_v6 = vsel %vm587_vm0, %v2357_v26, 0.0 }
 0x484   : > { %v2277_v12 = vsel %vm1176_vm11, %v2262_v42, %v2172_v11  ;;  %v2234_v4 = vsel %vm705_vm3, %v2218_v37, %v2129_v31  ;;  %v2381_v19 = vadd.f32 %v2380_v6, %v2356_v0 }
 0x485   : > { %v2584_v17 = vcombine.low %v2277_v12, %v3777_v63  ;;  %v2250_v33 = vsel %vm1142_vm10, %v2234_v4, %v2146_v24 }
 0x486   : > { %v2265_v46 = vsel %vm1159_vm12, %v2250_v33, %v3343_v55  ;;  %2382 = vadd.xlane.f32.xlu0 %v2381_v19 }
 0x487   : > { %v2330_v23 = vunpack.c.l.bf16 %v2584_v17  ;;  %v2331_v58 = vunpack.c.h.bf16 %v2584_v17  ;;  %v2280_v60 = vsel %vm1176_vm11, %v2265_v46, %v3358_v56  ;;  %v2174_v62 = vpop.permute.xlu0 %2173 }
 0x488   : > { %v2586_v15 = vcombine.low %v2280_v60, %v2917_v2  ;;  %v2279_v52 = vsel %vm1176_vm11, %v2264_v10, %v2174_v62 }
 0x489   : > { %v2359_v63 = vmul.f32 %v3833_v47, %v2331_v58  ;;  %v2585_v30 = vcombine.low %v2279_v52, %v2130_v16  ;;  %v2358_v55 = vmul.f32 %v3837_v34, %v2330_v23 }
 0x48a   : > { %v2334_v1 = vunpack.c.l.bf16 %v2586_v15  ;;  %v2335_v35 = vunpack.c.h.bf16 %v2586_v15 }
 0x48b   : > { %v2332_v44 = vunpack.c.l.bf16 %v2585_v30  ;;  %v2333_v7 = vunpack.c.h.bf16 %v2585_v30  ;;  %v2384_v56 = vsel %vm587_vm0, %v2359_v63, 0.0 }
 0x48c   : > { %v2385_v59 = vadd.f32 %v2384_v56, %v2358_v55  ;;  %v2362_v36 = vmul.f32 %v3837_v34, %v2334_v1  ;;  %v2363_v2 = vmul.f32 %v3833_v47, %v2335_v35 }
 0x48d   : > { %v2361_v32 = vmul.f32 %v3833_v47, %v2333_v7  ;;  %v2360_v21 = vmul.f32 %v3837_v34, %v2332_v44 }
 0x48e   : > { %2386 = vadd.xlane.f32.xlu1 %v2385_v59  ;;  %v2392_v61 = vsel %vm587_vm0, %v2363_v2, 0.0 }
 0x48f   : > { %v2393_v16 = vadd.f32 %v2392_v61, %v2362_v36  ;;  %v2388_v39 = vsel %vm587_vm0, %v2361_v32, 0.0 }
 0x490   : > { %v2389_v53 = vadd.f32 %v2388_v39, %v2360_v21 }
 0x492   : > { %2394 = vadd.xlane.f32.xlu1 %v2393_v16  ;;  %2390 = vadd.xlane.f32.xlu0 %v2389_v53 }
 0x4df   : > { %v2367_v18 = vpop.xlane.xlu1 %2366 }
 0x4e0   : > { %v2403_v22 = vadd.f32 %v2587_v14, %v2367_v18 }
 0x4e2   : > { %2411 = vst.msk [vmem:[%s403_s20] sm:$0xff] %vm1324_vm13, %v2403_v22 }
 0x4f3   : > { %v2371_v47 = vpop.xlane.xlu0 %2370 }
 0x4f4   : > { %v2404_v34 = vadd.f32 %v2587_v14, %v2371_v47 }
 0x4f6   : > { %2412 = vst.msk [vmem:[%s403_s20 + $0x8] sm:$0xff] %vm1324_vm13, %v2404_v34 }
 0x4ff   : > { %v2375_v25 = vpop.xlane.xlu0 %2374 }
 0x500   : > { %v2405_v43 = vadd.f32 %v2587_v14, %v2375_v25 }
 0x502   : > { %2413 = vst.msk [vmem:[%s403_s20 + $0x10] sm:$0xff] %vm1324_vm13, %v2405_v43 }
 0x507   : > { %v2379_v51 = vpop.xlane.xlu1 %2378 }
 0x508   : > { %v2406_v50 = vadd.f32 %v2587_v14, %v2379_v51 }
 0x50a   : > { %2414 = vst.msk [vmem:[%s403_s20 + $0x18] sm:$0xff] %vm1324_vm13, %v2406_v50 }
 0x513   : > { %v2383_v3 = vpop.xlane.xlu0 %2382 }
 0x514   : > { %v2407_v45 = vadd.f32 %v2587_v14, %v2383_v3 }
 0x516   : > { %2415 = vst.msk [vmem:[%s403_s20 + $0x20] sm:$0xff] %vm1324_vm13, %v2407_v45 }
 0x51b   : > { %v2387_v8 = vpop.xlane.xlu1 %2386 }
 0x51c   : > { %v2408_v9 = vadd.f32 %v2587_v14, %v2387_v8 }
 0x51e   : > { %2416 = vst.msk [vmem:[%s403_s20 + $0x28] sm:$0xff] %vm1324_vm13, %v2408_v9 }
 0x51f   : > { %v2395_v41 = vpop.xlane.xlu1 %2394  ;;  %v2391_v57 = vpop.xlane.xlu0 %2390 }
 0x520   : > { %v2410_v5 = vadd.f32 %v2587_v14, %v2395_v41  ;;  %v2409_v49 = vadd.f32 %v2587_v14, %v2391_v57 }
 0x522   : > { %2418 = vst.msk [vmem:[%s403_s20 + $0x38] sm:$0xff] %vm1324_vm13, %v2410_v5  ;;  %2417 = vst.msk [vmem:[%s403_s20 + $0x30] sm:$0xff] %vm1324_vm13, %v2409_v49 }
 0x523 PF: > { %s26_s21 = sadd.s32 1, %s2695_s21  }
 0x524   : > { %p23_p4 = scmp.ge.s32.totalorder %s26_s21, 4  }
 0x526   :  { %25 = sbr.rel (!%p23_p4) target bundleno = 3 (0x3), region = 102 }

</bundles_post_ra>
